<compile_context>
chip_gen: v5e
topology: v5e:2x2
jax: 0.10.0
libtpu: 0.0.40
codegen_flags: <defaults>
</compile_context>

<pallas_src>
import functools

import jax
import jax.numpy as jnp
from jax import lax
from jax.experimental import pallas as pl
from jax.experimental.pallas import tpu as pltpu

_EPS = 1e-5
_TN = 128      # Cout tile (lane-dense, unmasked stores)
_SLACK = 8     # trailing zero rows so bottom-right taps of junk rows stay in bounds


def _round_up(x, m):
    return (x + m - 1) // m * m


# ---------------------------------------------------------------------------
# In-kernel 3x3 tap accumulation (phase-flattened input, BN folded in weights)
# ---------------------------------------------------------------------------
def _accumulate_taps(x_ref, w_ref, lhs_scratch, *, ho, wph, hph, stride):
    """Sum of the 9 tap matmuls on the phase-flattened input.

    x_ref : (1, R, Cin) bf16, row ((a*s+b)*hph + i)*wph + j holds
            x_pad[i*s + a, j*s + b, :].
    w_ref : (9, Cin, TN) bf16, tap order kh*3 + kw, BN scale pre-folded.
    lhs_scratch : optional (rows, 3*Cin) bf16 VMEM scratch.  When present the
            3 kw taps of each kh are packed into one K=3*Cin matmul.
    Returns an f32 (ho*wph, TN) accumulator; rows with (r % wph) >= wo are
    junk and are handled by the caller.
    """
    rows = ho * wph
    phase = hph * wph
    cin = x_ref.shape[-1]
    tn = w_ref.shape[-1]

    def tap_start(kh, kw):
        p = (kh % stride) * stride + (kw % stride)
        return p * phase + (kh // stride) * wph + (kw // stride)

    acc = None
    for kh in range(3):
        if lhs_scratch is not None:
            # pack the 3 kw slices side by side -> one K = 3*Cin MXU pass
            for kw in range(3):
                s = tap_start(kh, kw)
                lhs_scratch[:, kw * cin:(kw + 1) * cin] = x_ref[0, s:s + rows, :]
            rhs = w_ref[kh * 3:kh * 3 + 3, :, :].reshape(3 * cin, tn)
            d = jnp.dot(lhs_scratch[...], rhs, preferred_element_type=jnp.float32)
        else:
            d = None
            for kw in range(3):
                s = tap_start(kh, kw)
                dd = jnp.dot(x_ref[0, s:s + rows, :], w_ref[kh * 3 + kw, :, :],
                             preferred_element_type=jnp.float32)
                d = dd if d is None else d + dd
        acc = d if acc is None else acc + d
    return acc


def _conv1_bn_relu_kernel(x_ref, w_ref, b_ref, o_ref, *scratch,
                          ho, wo, wph, hph, stride):
    """conv3x3(stride)+BN+ReLU, output stored directly in the zero-padded flat
    layout of the second conv (row i2*wph + j2 of o_ref holds y_pad[i2, j2])."""
    lhs_scratch = scratch[0] if scratch else None
    rows = ho * wph
    y = _accumulate_taps(x_ref, w_ref, lhs_scratch,
                         ho=ho, wph=wph, hph=hph, stride=stride)
    y = jnp.maximum(y + b_ref[...], 0.0)
    # junk columns (j >= wo) become the zero border of the padded layout
    col = lax.broadcasted_iota(jnp.int32, (rows, 1), 0) % wph
    y = jnp.where(col < wo, y, 0.0)
    r2 = o_ref.shape[1]
    tn = o_ref.shape[2]
    o_ref[0, 0:wph + 1, :] = jnp.zeros((wph + 1, tn), o_ref.dtype)
    o_ref[0, wph + 1:wph + 1 + rows, :] = y.astype(o_ref.dtype)
    o_ref[0, wph + 1 + rows:r2, :] = jnp.zeros((r2 - wph - 1 - rows, tn),
                                               o_ref.dtype)


def _conv2_bn_proj_add_relu_kernel(x_ref, w_ref, b_ref, xs_ref, ws_ref, bs_ref,
                                   o_ref, *scratch, ho, wph, hph):
    # left 3x3 conv + fused projection shortcut (1x1 conv on the strided input)
    lhs_scratch = scratch[0] if scratch else None
    y = _accumulate_taps(x_ref, w_ref, lhs_scratch,
                         ho=ho, wph=wph, hph=hph, stride=1)
    sc = jnp.dot(xs_ref[0, :, :], ws_ref[...], preferred_element_type=jnp.float32)
    y = y + b_ref[...] + sc + bs_ref[...]
    o_ref[0, :, :] = jnp.maximum(y, 0.0).astype(o_ref.dtype)


def _conv2_bn_res_add_relu_kernel(x_ref, w_ref, b_ref, res_ref, o_ref, *scratch,
                                  ho, wph, hph):
    # left 3x3 conv + identity shortcut (bf16 residual)
    lhs_scratch = scratch[0] if scratch else None
    y = _accumulate_taps(x_ref, w_ref, lhs_scratch,
                         ho=ho, wph=wph, hph=hph, stride=1)
    y = y + b_ref[...] + res_ref[0, :, :].astype(jnp.float32)
    o_ref[0, :, :] = jnp.maximum(y, 0.0).astype(o_ref.dtype)


# ---------------------------------------------------------------------------
# pallas_call wrapper: grid-order selection, specs, cost estimate
# ---------------------------------------------------------------------------
def _conv_call(kernel, x_flat, w3, b, extras, *, n, out_rows, coutp, out_dtype,
               compute_rows, extra_flops=0):
    """extras: list of (array, block_shape, kind), kind in {"img","cout","img_cout"}."""
    r_in, cin_k = x_flat.shape[1], x_flat.shape[2]
    nct = coutp // _TN

    # Grid order: keep the weight tile resident (outer) when re-fetching the
    # weights per image would cost more HBM traffic than re-fetching the
    # activations per Cout tile (dominant for late, channel-heavy layers).
    w_bytes = w3.size * w3.dtype.itemsize
    a_bytes = x_flat.size * x_flat.dtype.itemsize
    weight_outer = w_bytes * (n - 1) > a_bytes * (nct - 1)

    if weight_outer:
        grid = (nct, n)
        unpack = lambda a, b_: (b_, a)        # -> (image, cout_tile)
    else:
        grid = (n, nct)
        unpack = lambda a, b_: (a, b_)

    def img_map(a, b_):
        i, _c = unpack(a, b_); return (i, 0, 0)

    def w_map(a, b_):
        _i, c = unpack(a, b_); return (c, 0, 0)

    def cout_map(a, b_):
        _i, c = unpack(a, b_); return (0, c)

    def img_cout_map(a, b_):
        i, c = unpack(a, b_); return (i, 0, c)

    kind_maps = {"img": img_map, "cout": cout_map, "img_cout": img_cout_map}

    in_specs = [pl.BlockSpec((1, r_in, cin_k), img_map),
                pl.BlockSpec((9, cin_k, _TN), w_map),
                pl.BlockSpec((1, _TN), cout_map)]
    args = [x_flat, w3, b]
    for arr, shape, kind in extras:
        in_specs.append(pl.BlockSpec(shape, kind_maps[kind]))
        args.append(arr)

    # K=3*Cin tap packing scratch, only when Cin underfills the MXU depth.
    scratch_shapes = ([pltpu.VMEM((compute_rows, 3 * cin_k), jnp.bfloat16)]
                      if cin_k < 128 else [])

    out_isize = 2 if out_dtype == jnp.bfloat16 else 4
    flops = 2 * n * compute_rows * 9 * cin_k * coutp + extra_flops
    bytes_accessed = (a_bytes * (nct if weight_outer else 1)
                      + w_bytes * (1 if weight_outer else n)
                      + b.size * 4
                      + sum(a.size * a.dtype.itemsize for a, _, _ in extras)
                      + n * out_rows * coutp * out_isize)

    return pl.pallas_call(
        kernel,
        out_shape=jax.ShapeDtypeStruct((n, out_rows, coutp), out_dtype),
        grid_spec=pltpu.PrefetchScalarGridSpec(
            num_scalar_prefetch=0,
            grid=grid,
            in_specs=in_specs,
            out_specs=pl.BlockSpec((1, out_rows, _TN), img_cout_map),
            scratch_shapes=scratch_shapes),
        compiler_params=pltpu.CompilerParams(
            dimension_semantics=("parallel", "parallel"),
            vmem_limit_bytes=64 * 1024 * 1024),
        cost_estimate=pl.CostEstimate(flops=flops, transcendentals=0,
                                      bytes_accessed=bytes_accessed),
    )(*args)


# ---------------------------------------------------------------------------
# Glue: phase-flatten (cheap space-to-depth), weight layout, BN folding
# ---------------------------------------------------------------------------
def _phase_flat(x_nhwc, stride, wph, cin_p):
    """Zero-pad for the 3x3 conv (pad=1), split into stride^2 phases, flatten:
        flat[n, ((a*s+b)*hph + i)*wph + j, c] = x_pad[n, i*s + a, j*s + b, c]
    Channels are zero-padded to cin_p; _SLACK zero rows appended (tap over-read
    safety — this invariant must be preserved)."""
    n, h, w, c = x_nhwc.shape
    wp = wph * stride
    hp = _round_up(h + 2, stride)
    hph = hp // stride
    assert wp >= w + 2
    xp = jnp.pad(x_nhwc, ((0, 0), (1, hp - h - 1), (1, wp - w - 1), (0, cin_p - c)))
    xr = xp.reshape(n, hph, stride, wph, stride, cin_p)
    ph = jnp.transpose(xr, (0, 2, 4, 1, 3, 5))         # (n, s, s, hph, wph, c)
    flat = ph.reshape(n, stride * stride * hph * wph, cin_p)
    flat = jnp.pad(flat, ((0, 0), (0, _SLACK), (0, 0)))
    return flat, hph


def _bn_fold(gamma, beta, mean, var):
    scale = gamma / jnp.sqrt(var + _EPS)
    return scale, beta - mean * scale


def _w3x3_taps(w_oihw, scale, cin_p, coutp):
    """(Cout,Cin,3,3) -> (nct*9, Cin_p, TN) bf16, BN scale folded, contiguous
    per-Cout-tile layout."""
    cout, cin = w_oihw.shape[0], w_oihw.shape[1]
    nct = coutp // _TN
    w = jnp.transpose(w_oihw, (2, 3, 1, 0)).reshape(9, cin, cout)
    w = w * scale.reshape(1, 1, cout)
    w = jnp.pad(w, ((0, 0), (0, cin_p - cin), (0, coutp - cout)))
    w = w.reshape(9, cin_p, nct, _TN).transpose(2, 0, 1, 3).reshape(nct * 9, cin_p, _TN)
    return w.astype(jnp.bfloat16)


def _w1x1(w_oihw, scale, cin_p, coutp):
    cout, cin = w_oihw.shape[0], w_oihw.shape[1]
    w = w_oihw.reshape(cout, cin).T * scale.reshape(1, cout)
    w = jnp.pad(w, ((0, cin_p - cin), (0, coutp - cout)))
    return w.astype(jnp.bfloat16)


def _bias_pad(bias, coutp):
    return jnp.pad(bias, (0, coutp - bias.shape[0])).reshape(1, coutp).astype(jnp.float32)


# ---------------------------------------------------------------------------
# ResidualBlock forward (NCHW in / NCHW out)
# ---------------------------------------------------------------------------
def residual_block_forward(x_nchw, params, stride):
    x = jnp.transpose(x_nchw, (0, 2, 3, 1)).astype(jnp.float32)   # NHWC
    n, h, w, cin = x.shape
    cout = params["w1"].shape[0]
    coutp = _round_up(cout, _TN)
    cin_p = _round_up(cin, 8)
    ho = (h - 1) // stride + 1
    wo = (w - 1) // stride + 1
    wp2 = wo + 2                      # padded row width of the stage-2 layout
    rows2 = ho * wp2                  # compute rows of both stages
    r2 = (ho + 2) * wp2 + _SLACK      # stage-1 output / stage-2 input rows

    # ---- stage 1: conv3x3(stride) + BN1 + ReLU (fused) ----------------------
    # bf16 output written directly in the padded flat layout of stage 2:
    # no inter-stage slice/pad/reshape, single HBM pass of the activation.
    sc1, bi1 = _bn_fold(params["bn1_gamma"], params["bn1_beta"],
                        params["bn1_mean"], params["bn1_var"])
    w1 = _w3x3_taps(params["w1"], sc1, cin_p, coutp)
    b1 = _bias_pad(bi1, coutp)
    x1, hph1 = _phase_flat(x.astype(jnp.bfloat16), stride, wp2, cin_p)
    x2 = _conv_call(
        functools.partial(_conv1_bn_relu_kernel, ho=ho, wo=wo, wph=wp2,
                          hph=hph1, stride=stride),
        x1, w1, b1, [],
        n=n, out_rows=r2, coutp=coutp, out_dtype=jnp.bfloat16,
        compute_rows=rows2)

    # ---- stage 2: conv3x3(1) + BN2 + shortcut + ReLU (fused) ----------------
    sc2, bi2 = _bn_fold(params["bn2_gamma"], params["bn2_beta"],
                        params["bn2_mean"], params["bn2_var"])
    w2 = _w3x3_taps(params["w2"], sc2, coutp, coutp)
    b2 = _bias_pad(bi2, coutp)

    if stride != 1 or cin != cout:
        # projection shortcut: 1x1 conv(stride) + BNs fused into the kernel
        scs, bis = _bn_fold(params["bns_gamma"], params["bns_beta"],
                            params["bns_mean"], params["bns_var"])
        ws = _w1x1(params["ws"], scs, cin_p, coutp)
        bs = _bias_pad(bis, coutp)
        xs = x[:, ::stride, ::stride, :]                         # (n, ho, wo, cin)
        xs = jnp.pad(xs, ((0, 0), (0, 0), (0, wp2 - wo), (0, cin_p - cin)))
        xs = xs.reshape(n, rows2, cin_p).astype(jnp.bfloat16)
        out = _conv_call(
            functools.partial(_conv2_bn_proj_add_relu_kernel, ho=ho, wph=wp2,
                              hph=ho + 2),
            x2, w2, b2,
            [(xs, (1, rows2, cin_p), "img"),
             (ws, (cin_p, _TN), "cout"),
             (bs, (1, _TN), "cout")],
            n=n, out_rows=rows2, coutp=coutp, out_dtype=jnp.float32,
            compute_rows=rows2, extra_flops=2 * n * rows2 * cin_p * coutp)
    else:
        # identity shortcut: residual read as bf16, padded to the output lanes
        res = jnp.pad(x, ((0, 0), (0, 0), (0, wp2 - w), (0, coutp - cout)))
        res = res.reshape(n, rows2, coutp).astype(jnp.bfloat16)
        out = _conv_call(
            functools.partial(_conv2_bn_res_add_relu_kernel, ho=ho, wph=wp2,
                              hph=ho + 2),
            x2, w2, b2,
            [(res, (1, rows2, _TN), "img_cout")],
            n=n, out_rows=rows2, coutp=coutp, out_dtype=jnp.float32,
            compute_rows=rows2)

    out = out.reshape(n, ho, wp2, coutp)[:, :, :wo, :cout]
    return jnp.transpose(out, (0, 3, 1, 2))                      # back to NCHW


# ---------------------------------------------------------------------------
# Pure-JAX reference for validation
# ---------------------------------------------------------------------------
def _ref_forward(x, params, stride):
    def conv(x, w, s, pad):
        return lax.conv_general_dilated(
            x, w, (s, s), [(pad, pad), (pad, pad)],
            dimension_numbers=("NCHW", "OIHW", "NCHW"),
            precision=lax.Precision.HIGHEST)

    def bn(x, g, b, m, v):
        g, b, m, v = (a[None, :, None, None] for a in (g, b, m, v))
        return (x - m) / jnp.sqrt(v + _EPS) * g + b

    left = conv(x, params["w1"], stride, 1)
    left = jax.nn.relu(bn(left, params["bn1_gamma"], params["bn1_beta"],
                          params["bn1_mean"], params["bn1_var"]))
    left = conv(left, params["w2"], 1, 1)
    left = bn(left, params["bn2_gamma"], params["bn2_beta"],
              params["bn2_mean"], params["bn2_var"])
    if "ws" in params:
        sc = conv(x, params["ws"], stride, 0)
        sc = bn(sc, params["bns_gamma"], params["bns_beta"],
                params["bns_mean"], params["bns_var"])
    else:
        sc = x
    return jax.nn.relu(left + sc)


# ---------------------------------------------------------------------------
if __name__ == "__main__":
    key = jax.random.PRNGKey(0)
    N, Cin, Cout, H, W, stride = 2, 4, 8, 16, 16, 2

    kx, k1, k2, ks, kx2, k1b, k2b = jax.random.split(key, 7)
    x = jax.random.normal(kx, (N, Cin, H, W), jnp.float32)

    def bn_params(prefix, c, off):
        return {
            f"{prefix}_gamma": 1.0 + 0.05 * jnp.arange(c, dtype=jnp.float32),
            f"{prefix}_beta": 0.02 * jnp.arange(c, dtype=jnp.float32) - 0.1,
            f"{prefix}_mean": 0.01 * (jnp.arange(c, dtype=jnp.float32) + off),
            f"{prefix}_var": 1.0 + 0.1 * jnp.arange(c, dtype=jnp.float32),
        }

    # ---- projection-shortcut case (stride=2, cin != cout) ------------------
    params = {
        "w1": 0.1 * jax.random.normal(k1, (Cout, Cin, 3, 3), jnp.float32),
        "w2": 0.1 * jax.random.normal(k2, (Cout, Cout, 3, 3), jnp.float32),
        "ws": 0.1 * jax.random.normal(ks, (Cout, Cin, 1, 1), jnp.float32),
    }
    params.update(bn_params("bn1", Cout, 1.0))
    params.update(bn_params("bn2", Cout, 2.0))
    params.update(bn_params("bns", Cout, 3.0))

    out = jax.block_until_ready(residual_block_forward(x, params, stride))
    ref = jax.block_until_ready(_ref_forward(x, params, stride))
    assert out.shape == (N, Cout, H // stride, W // stride), out.shape
    # bf16 operands (f32 accumulation) -> compare against f32 reference loosely
    assert jnp.allclose(out, ref, atol=2e-2, rtol=2e-2), float(
        jnp.max(jnp.abs(out - ref)))

    # ---- identity-shortcut case (stride=1, cin == cout) ---------------------
    x_id = jax.random.normal(kx2, (N, Cout, H, W), jnp.float32)
    params_id = {
        "w1": 0.1 * jax.random.normal(k1b, (Cout, Cout, 3, 3), jnp.float32),
        "w2": 0.1 * jax.random.normal(k2b, (Cout, Cout, 3, 3), jnp.float32),
    }
    params_id.update(bn_params("bn1", Cout, 1.0))
    params_id.update(bn_params("bn2", Cout, 2.0))

    out_id = jax.block_until_ready(residual_block_forward(x_id, params_id, 1))
    ref_id = jax.block_until_ready(_ref_forward(x_id, params_id, 1))
    assert out_id.shape == (N, Cout, H, W), out_id.shape
    assert jnp.allclose(out_id, ref_id, atol=2e-2, rtol=2e-2), float(
        jnp.max(jnp.abs(out_id - ref_id)))

    print("KERNEL_OK")
</pallas_src>

<mosaic_0001>
module attributes {stable_mosaic.version = 11 : i64} {
  func.func @_conv1_bn_relu_kernel(%arg0: i32, %arg1: i32, %arg2: memref<1x368x8xbf16, #tpu.memory_space<vmem>>, %arg3: memref<9x8x128xbf16, #tpu.memory_space<vmem>>, %arg4: memref<1x128xf32, #tpu.memory_space<vmem>>, %arg5: memref<1x108x128xbf16, #tpu.memory_space<vmem>>, %arg6: memref<80x24xbf16, #tpu.memory_space<vmem>>) attributes {dimension_semantics = [#tpu.dimension_semantics<parallel>, #tpu.dimension_semantics<parallel>], iteration_bounds = array<i64: 1, 2>, scalar_prefetch = 0 : i64, scratch_operands = 1 : i64, tpu.core_type = #tpu.core_type<tc>, window_params = [{transform_indices = @transform_0, window_bounds = array<i64: 1, 368, 8>}, {transform_indices = @transform_1, window_bounds = array<i64: 9, 8, 128>}, {transform_indices = @transform_2, window_bounds = array<i64: 1, 128>}, {transform_indices = @transform_3, window_bounds = array<i64: 1, 108, 128>}]} {
    %c0 = arith.constant 0 : index
    %c0_0 = arith.constant 0 : index
    %c0_1 = arith.constant 0 : index
    %0 = vector.load %arg2[%c0, %c0_0, %c0_1] : memref<1x368x8xbf16, #tpu.memory_space<vmem>>, vector<1x80x8xbf16>
    %1 = vector.shape_cast %0 : vector<1x80x8xbf16> to vector<80x8xbf16>
    %c0_2 = arith.constant 0 : index
    %c0_3 = arith.constant 0 : index
    %2 = vector.load %arg6[%c0_2, %c0_3] : memref<80x24xbf16, #tpu.memory_space<vmem>>, vector<80x8xbf16>
    tpu.vector_store %arg6[%c0_2, %c0_3], %1 {strides = array<i32>} : memref<80x24xbf16, #tpu.memory_space<vmem>>, vector<80x8xbf16>,
    %c0_4 = arith.constant 0 : index
    %c90 = arith.constant 90 : index
    %c0_5 = arith.constant 0 : index
    %3 = vector.load %arg2[%c0_4, %c90, %c0_5] : memref<1x368x8xbf16, #tpu.memory_space<vmem>>, vector<1x80x8xbf16>
    %4 = vector.shape_cast %3 : vector<1x80x8xbf16> to vector<80x8xbf16>
    %c0_6 = arith.constant 0 : index
    %c8 = arith.constant 8 : index
    %5 = vector.load %arg6[%c0_6, %c8] : memref<80x24xbf16, #tpu.memory_space<vmem>>, vector<80x8xbf16>
    tpu.vector_store %arg6[%c0_6, %c8], %4 {strides = array<i32>} : memref<80x24xbf16, #tpu.memory_space<vmem>>, vector<80x8xbf16>,
    %c0_7 = arith.constant 0 : index
    %c1 = arith.constant 1 : index
    %c0_8 = arith.constant 0 : index
    %6 = vector.load %arg2[%c0_7, %c1, %c0_8] : memref<1x368x8xbf16, #tpu.memory_space<vmem>>, vector<1x80x8xbf16>
    %7 = vector.shape_cast %6 : vector<1x80x8xbf16> to vector<80x8xbf16>
    %c0_9 = arith.constant 0 : index
    %c16 = arith.constant 16 : index
    %8 = vector.load %arg6[%c0_9, %c16] : memref<80x24xbf16, #tpu.memory_space<vmem>>, vector<80x8xbf16>
    tpu.vector_store %arg6[%c0_9, %c16], %7 {strides = array<i32>} : memref<80x24xbf16, #tpu.memory_space<vmem>>, vector<80x8xbf16>,
    %c0_10 = arith.constant 0 : index
    %c0_11 = arith.constant 0 : index
    %c0_12 = arith.constant 0 : index
    %9 = vector.load %arg3[%c0_10, %c0_11, %c0_12] : memref<9x8x128xbf16, #tpu.memory_space<vmem>>, vector<3x8x128xbf16>
    %10 = vector.shape_cast %9 : vector<3x8x128xbf16> to vector<24x128xbf16>
    %c0_13 = arith.constant 0 : index
    %c0_14 = arith.constant 0 : index
    %11 = vector.load %arg6[%c0_13, %c0_14] : memref<80x24xbf16, #tpu.memory_space<vmem>>, vector<80x24xbf16>
    %cst = arith.constant dense<0.000000e+00> : vector<80x128xf32>
    %12 = tpu.matmul %11, %10, %cst {dimension_numbers = #tpu.dot_dimension_numbers<[1], [0], [0], [1], [0, 0, 1, 1], [], []>} : vector<80x24xbf16>, vector<24x128xbf16>, vector<80x128xf32> -> vector<80x128xf32>
    %c0_15 = arith.constant 0 : index
    %c180 = arith.constant 180 : index
    %c0_16 = arith.constant 0 : index
    %13 = vector.load %arg2[%c0_15, %c180, %c0_16] : memref<1x368x8xbf16, #tpu.memory_space<vmem>>, vector<1x80x8xbf16>
    %14 = vector.shape_cast %13 : vector<1x80x8xbf16> to vector<80x8xbf16>
    %c0_17 = arith.constant 0 : index
    %c0_18 = arith.constant 0 : index
    %15 = vector.load %arg6[%c0_17, %c0_18] : memref<80x24xbf16, #tpu.memory_space<vmem>>, vector<80x8xbf16>
    tpu.vector_store %arg6[%c0_17, %c0_18], %14 {strides = array<i32>} : memref<80x24xbf16, #tpu.memory_space<vmem>>, vector<80x8xbf16>,
    %c0_19 = arith.constant 0 : index
    %c270 = arith.constant 270 : index
    %c0_20 = arith.constant 0 : index
    %16 = vector.load %arg2[%c0_19, %c270, %c0_20] : memref<1x368x8xbf16, #tpu.memory_space<vmem>>, vector<1x80x8xbf16>
    %17 = vector.shape_cast %16 : vector<1x80x8xbf16> to vector<80x8xbf16>
    %c0_21 = arith.constant 0 : index
    %c8_22 = arith.constant 8 : index
    %18 = vector.load %arg6[%c0_21, %c8_22] : memref<80x24xbf16, #tpu.memory_space<vmem>>, vector<80x8xbf16>
    tpu.vector_store %arg6[%c0_21, %c8_22], %17 {strides = array<i32>} : memref<80x24xbf16, #tpu.memory_space<vmem>>, vector<80x8xbf16>,
    %c0_23 = arith.constant 0 : index
    %c181 = arith.constant 181 : index
    %c0_24 = arith.constant 0 : index
    %19 = vector.load %arg2[%c0_23, %c181, %c0_24] : memref<1x368x8xbf16, #tpu.memory_space<vmem>>, vector<1x80x8xbf16>
    %20 = vector.shape_cast %19 : vector<1x80x8xbf16> to vector<80x8xbf16>
    %c0_25 = arith.constant 0 : index
    %c16_26 = arith.constant 16 : index
    %21 = vector.load %arg6[%c0_25, %c16_26] : memref<80x24xbf16, #tpu.memory_space<vmem>>, vector<80x8xbf16>
    tpu.vector_store %arg6[%c0_25, %c16_26], %20 {strides = array<i32>} : memref<80x24xbf16, #tpu.memory_space<vmem>>, vector<80x8xbf16>,
    %c3 = arith.constant 3 : index
    %c0_27 = arith.constant 0 : index
    %c0_28 = arith.constant 0 : index
    %22 = vector.load %arg3[%c3, %c0_27, %c0_28] : memref<9x8x128xbf16, #tpu.memory_space<vmem>>, vector<3x8x128xbf16>
    %23 = vector.shape_cast %22 : vector<3x8x128xbf16> to vector<24x128xbf16>
    %c0_29 = arith.constant 0 : index
    %c0_30 = arith.constant 0 : index
    %24 = vector.load %arg6[%c0_29, %c0_30] : memref<80x24xbf16, #tpu.memory_space<vmem>>, vector<80x24xbf16>
    %cst_31 = arith.constant dense<0.000000e+00> : vector<80x128xf32>
    %25 = tpu.matmul %24, %23, %cst_31 {dimension_numbers = #tpu.dot_dimension_numbers<[1], [0], [0], [1], [0, 0, 1, 1], [], []>} : vector<80x24xbf16>, vector<24x128xbf16>, vector<80x128xf32> -> vector<80x128xf32>
    %26 = arith.addf %12, %25 : vector<80x128xf32>
    %c0_32 = arith.constant 0 : index
    %c10 = arith.constant 10 : index
    %c0_33 = arith.constant 0 : index
    %27 = vector.load %arg2[%c0_32, %c10, %c0_33] : memref<1x368x8xbf16, #tpu.memory_space<vmem>>, vector<1x80x8xbf16>
    %28 = vector.shape_cast %27 : vector<1x80x8xbf16> to vector<80x8xbf16>
    %c0_34 = arith.constant 0 : index
    %c0_35 = arith.constant 0 : index
    %29 = vector.load %arg6[%c0_34, %c0_35] : memref<80x24xbf16, #tpu.memory_space<vmem>>, vector<80x8xbf16>
    tpu.vector_store %arg6[%c0_34, %c0_35], %28 {strides = array<i32>} : memref<80x24xbf16, #tpu.memory_space<vmem>>, vector<80x8xbf16>,
    %c0_36 = arith.constant 0 : index
    %c100 = arith.constant 100 : index
    %c0_37 = arith.constant 0 : index
    %30 = vector.load %arg2[%c0_36, %c100, %c0_37] : memref<1x368x8xbf16, #tpu.memory_space<vmem>>, vector<1x80x8xbf16>
    %31 = vector.shape_cast %30 : vector<1x80x8xbf16> to vector<80x8xbf16>
    %c0_38 = arith.constant 0 : index
    %c8_39 = arith.constant 8 : index
    %32 = vector.load %arg6[%c0_38, %c8_39] : memref<80x24xbf16, #tpu.memory_space<vmem>>, vector<80x8xbf16>
    tpu.vector_store %arg6[%c0_38, %c8_39], %31 {strides = array<i32>} : memref<80x24xbf16, #tpu.memory_space<vmem>>, vector<80x8xbf16>,
    %c0_40 = arith.constant 0 : index
    %c11 = arith.constant 11 : index
    %c0_41 = arith.constant 0 : index
    %33 = vector.load %arg2[%c0_40, %c11, %c0_41] : memref<1x368x8xbf16, #tpu.memory_space<vmem>>, vector<1x80x8xbf16>
    %34 = vector.shape_cast %33 : vector<1x80x8xbf16> to vector<80x8xbf16>
    %c0_42 = arith.constant 0 : index
    %c16_43 = arith.constant 16 : index
    %35 = vector.load %arg6[%c0_42, %c16_43] : memref<80x24xbf16, #tpu.memory_space<vmem>>, vector<80x8xbf16>
    tpu.vector_store %arg6[%c0_42, %c16_43], %34 {strides = array<i32>} : memref<80x24xbf16, #tpu.memory_space<vmem>>, vector<80x8xbf16>,
    %c6 = arith.constant 6 : index
    %c0_44 = arith.constant 0 : index
    %c0_45 = arith.constant 0 : index
    %36 = vector.load %arg3[%c6, %c0_44, %c0_45] : memref<9x8x128xbf16, #tpu.memory_space<vmem>>, vector<3x8x128xbf16>
    %37 = vector.shape_cast %36 : vector<3x8x128xbf16> to vector<24x128xbf16>
    %c0_46 = arith.constant 0 : index
    %c0_47 = arith.constant 0 : index
    %38 = vector.load %arg6[%c0_46, %c0_47] : memref<80x24xbf16, #tpu.memory_space<vmem>>, vector<80x24xbf16>
    %cst_48 = arith.constant dense<0.000000e+00> : vector<80x128xf32>
    %39 = tpu.matmul %38, %37, %cst_48 {dimension_numbers = #tpu.dot_dimension_numbers<[1], [0], [0], [1], [0, 0, 1, 1], [], []>} : vector<80x24xbf16>, vector<24x128xbf16>, vector<80x128xf32> -> vector<80x128xf32>
    %40 = arith.addf %26, %39 : vector<80x128xf32>
    %c0_49 = arith.constant 0 : index
    %c0_50 = arith.constant 0 : index
    %41 = vector.load %arg4[%c0_49, %c0_50] : memref<1x128xf32, #tpu.memory_space<vmem>>, vector<1x128xf32>
    %42 = vector.broadcast %41 : vector<1x128xf32> to vector<80x128xf32>
    %43 = arith.addf %40, %42 : vector<80x128xf32>
    %cst_51 = arith.constant 0.000000e+00 : f32
    %44 = vector.broadcast %cst_51 : f32 to vector<80x128xf32>
    %45 = arith.maximumf %43, %44 : vector<80x128xf32>
    %46 = tpu.iota {dimensions = array<i32: 0>} : vector<80x1xi32>
    %c10_i32 = arith.constant 10 : i32
    %c0_i32 = arith.constant 0 : i32
    %47 = arith.cmpi eq, %c10_i32, %c0_i32 : i32
    %c1_i32 = arith.constant 1 : i32
    %48 = arith.select %47, %c1_i32, %c10_i32 : i32
    %49 = vector.broadcast %48 : i32 to vector<80x1xi32>
    %50 = arith.remsi %46, %49 : vector<80x1xi32>
    %c0_i32_52 = arith.constant 0 : i32
    %51 = vector.broadcast %c0_i32_52 : i32 to vector<80x1xi32>
    %52 = arith.cmpi ne, %50, %51 : vector<80x1xi32>
    %c0_i32_53 = arith.constant 0 : i32
    %53 = vector.broadcast %c0_i32_53 : i32 to vector<80x1xi32>
    %54 = arith.cmpi slt, %50, %53 : vector<80x1xi32>
    %c0_i32_54 = arith.constant 0 : i32
    %55 = arith.cmpi slt, %48, %c0_i32_54 : i32
    %56 = vector.broadcast %55 : i1 to vector<80x1xi1>
    %57 = vector.broadcast %56 : vector<80x1xi1> to vector<80x1xi1>
    %58 = arith.xori %54, %57 : vector<80x1xi1>
    %59 = arith.andi %58, %52 : vector<80x1xi1>
    %60 = vector.broadcast %48 : i32 to vector<80x1xi32>
    %61 = arith.addi %50, %60 : vector<80x1xi32>
    %62 = arith.select %59, %61, %50 : vector<80x1xi1>, vector<80x1xi32>
    %c8_i32 = arith.constant 8 : i32
    %63 = vector.broadcast %c8_i32 : i32 to vector<80x1xi32>
    %64 = arith.cmpi slt, %62, %63 : vector<80x1xi32>
    %cst_55 = arith.constant 0.000000e+00 : f32
    %65 = vector.shape_cast %64 : vector<80x1xi1> to vector<80x1xi1>
    %66 = vector.broadcast %65 : vector<80x1xi1> to vector<80x128xi1>
    %67 = vector.broadcast %cst_55 : f32 to vector<80x128xf32>
    %68 = arith.select %66, %45, %67 : vector<80x128xi1>, vector<80x128xf32>
    %cst_56 = arith.constant 0.000000e+00 : bf16
    %69 = vector.broadcast %cst_56 : bf16 to vector<11x128xbf16>
    %c0_57 = arith.constant 0 : index
    %c0_58 = arith.constant 0 : index
    %c0_59 = arith.constant 0 : index
    %70 = vector.load %arg5[%c0_57, %c0_58, %c0_59] : memref<1x108x128xbf16, #tpu.memory_space<vmem>>, vector<1x11x128xbf16>
    %71 = vector.shape_cast %70 : vector<1x11x128xbf16> to vector<11x128xbf16>
    %72 = vector.shape_cast %69 : vector<11x128xbf16> to vector<1x11x128xbf16>
    tpu.vector_store %arg5[%c0_57, %c0_58, %c0_59], %72 {strides = array<i32>} : memref<1x108x128xbf16, #tpu.memory_space<vmem>>, vector<1x11x128xbf16>,
    %73 = arith.truncf %68 : vector<80x128xf32> to vector<80x128xbf16>
    %c0_60 = arith.constant 0 : index
    %c11_61 = arith.constant 11 : index
    %c0_62 = arith.constant 0 : index
    %74 = vector.load %arg5[%c0_60, %c11_61, %c0_62] : memref<1x108x128xbf16, #tpu.memory_space<vmem>>, vector<1x80x128xbf16>
    %75 = vector.shape_cast %74 : vector<1x80x128xbf16> to vector<80x128xbf16>
    %76 = vector.shape_cast %73 : vector<80x128xbf16> to vector<1x80x128xbf16>
    tpu.vector_store %arg5[%c0_60, %c11_61, %c0_62], %76 {strides = array<i32>} : memref<1x108x128xbf16, #tpu.memory_space<vmem>>, vector<1x80x128xbf16>,
    %cst_63 = arith.constant 0.000000e+00 : bf16
    %77 = vector.broadcast %cst_63 : bf16 to vector<17x128xbf16>
    %c0_64 = arith.constant 0 : index
    %c91 = arith.constant 91 : index
    %c0_65 = arith.constant 0 : index
    %78 = vector.load %arg5[%c0_64, %c91, %c0_65] : memref<1x108x128xbf16, #tpu.memory_space<vmem>>, vector<1x17x128xbf16>
    %79 = vector.shape_cast %78 : vector<1x17x128xbf16> to vector<17x128xbf16>
    %80 = vector.shape_cast %77 : vector<17x128xbf16> to vector<1x17x128xbf16>
    tpu.vector_store %arg5[%c0_64, %c91, %c0_65], %80 {strides = array<i32>} : memref<1x108x128xbf16, #tpu.memory_space<vmem>>, vector<1x17x128xbf16>,
    return
  }
  func.func @transform_0(%arg0: i32, %arg1: i32) -> (i32, i32, i32) {
    %c0_i32 = arith.constant 0 : i32
    %c0_i32_0 = arith.constant 0 : i32
    %c0_i32_1 = arith.constant 0 : i32
    return %arg1, %c0_i32, %c0_i32_0 : i32, i32, i32
  }
  func.func @transform_1(%arg0: i32, %arg1: i32) -> (i32, i32, i32) {
    %c0_i32 = arith.constant 0 : i32
    %c0_i32_0 = arith.constant 0 : i32
    %c0_i32_1 = arith.constant 0 : i32
    return %arg0, %c0_i32, %c0_i32_0 : i32, i32, i32
  }
  func.func @transform_2(%arg0: i32, %arg1: i32) -> (i32, i32) {
    %c0_i32 = arith.constant 0 : i32
    %c0_i32_0 = arith.constant 0 : i32
    return %c0_i32, %arg0 : i32, i32
  }
  func.func @transform_3(%arg0: i32, %arg1: i32) -> (i32, i32, i32) {
    %c0_i32 = arith.constant 0 : i32
    %c0_i32_0 = arith.constant 0 : i32
    return %arg1, %c0_i32, %arg0 : i32, i32, i32
  }
}

</mosaic_0001>

<bundles_post_ra>
// kernel: tpu_custom_call.1
= control target key start
LH: loop header
LB: loop body
LE: loop exit
PB: predicated region body
PF: predicated region fallthrough
CT: control target
= control target key end

     0   :  { %s2356_s12 = smov 0   ;;  %s2358_s13 = smov 0   ;;  %s3388_s0 = inlined_call_operand.vmem [shape: bf16[2,368,8], index: 0, kind: input, shape index: {}]   ;;  %s3389_s1 = inlined_call_operand.vmem [shape: bf16[9,8,128], index: 1, kind: input, shape index: {}]   ;;  %s3390_s2 = inlined_call_operand.vmem [shape: f32[1,128], index: 2, kind: input, shape index: {}]   ;;  %s3391_s3 = inlined_call_operand.vmem [shape: bf16[2,108,128], index: 3, kind: output, shape index: {}]  }
   0x1   :  { %s2360_s14 = smov 0  }
   0x2 LB: > { %s22_s15 = sadd.s32 1, %s2327_s13  ;;  %p2152_p0 = scmp.ge.s32.totalorder %s2331_s14, 1  ;;  %s2331_s14 = sphi %s2360_s14, %s13_s14   ;;  %s2327_s13 = sphi %s2358_s13, %s3429_s13   ;;  %s2323_s12 = sphi %s2356_s12, %s3428_s12  }
   0x3   : > { %p23_p1 = scmp.ge.s32.totalorder %s22_s15, 2  ;;  %p170_p2 = scmp.lt.s32.totalorder %s2331_s14, 3 }
   0x5   : > { %s3431_s15 = smov (%p23_p1, %s22_s15), 0  ;;  %p171_p3 = pnand %p2152_p0, %p170_p2 }
   0x6   : > { %p205_p4 = scmp.lt.s32.totalorder (!%p171_p3), %s2323_s12, 1  ;;  %s2333_s20 = smov (!%p171_p3), 8  }
   0x7   : > { %174 = sbr.rel (%p171_p3) target bundleno = 461 (0x1cd), region = 32  ;;  %s2334_s21 = smov (!%p171_p3), 16  }
   0xc   : > { %s3433_s12 = smov (!%p205_p4, %s2323_s12), 1  ;;  %vm271_vm0 = vcmask 1042432   ;;  %vm272_vm1 = vcmask 1046532   ;;  %vm357_vm2 = vsmask.f32 3328  ;;  %vm616_vm6 = vcmask 1040384  }
   0xd   : > { %s2279_s16 = smul.u32 184, %s3433_s12  ;;  %vm358_vm3 = vsmask.f32 7440  ;;  %vm2389_vm4 = vmor %vm271_vm0, %vm272_vm1  ;;  %vm617_vm7 = vcmask 1044484   ;;  %vm701_vm9 = vsmask.f32 1280 }
   0xe   : > { %vm2410_vm5 = vmor %vm357_vm2, %vm358_vm3  ;;  %vm702_vm10 = vsmask.f32 5392  ;;  %vm540_vm12 = vcmask 1041408   ;;  %vm541_vm13 = vcmask 1045508   ;;  %vm1217_vm15 = vsmask.f32 2304 }
   0xf   : > { %s2380_s19 = scalar_lea.vmem %s3388_s0, %s2279_s16  ;;  %vm2429_vm8 = vmor %vm616_vm6, %vm617_vm7  ;;  %vm1218_vm0 = vsmask.f32 6416  ;;  %vm238_vm2 = vcmask 60416   ;;  %vm916_vm3 = vcmask 1043456   ;;  %vm494_vm6 = vcmask 191616   ;;  %s2280_s7 = smul.u32 56, %s3433_s12 }
  0x10   : > { %v2383_v0 = vld [vmem:[%s2380_s19 + $0x34] sm:$0xf]  ;;  %v252_v1 = vld [vmem:[%s2380_s19 + $0x38] sm:$0xf]  ;;  %v348_v2 = vld [vmem:[%s2380_s19 + $0x8] sm:$0xf] }
  0x11   : > { %v279_v3 = vrot.slane %v2383_v0, 5  ;;  %v282_v4 = vrot.slane %v252_v1, 5  ;;  %v349_v5 = vld [vmem:[%s2380_s19 + $0xc] sm:$0xf]  ;;  %v380_v6 = vshll.u32 %v348_v2, 16  ;;  %v384_v7 = vshrl.u32 %v348_v2, 16  ;;  %vm2445_vm11 = vmor %vm701_vm9, %vm702_vm10  ;;  %s3082_s10 = scalar_lea.vmem %s3391_s3, %s2280_s7 }
  0x12   : > { %v390_v9 = vshll.u32 %v349_v5, 16  ;;  %v394_v10 = vshrl.u32 %v349_v5, 16  ;;  %v2394_v11 = vld [vmem:[%s2380_s19 + $0x3c] sm:$0xf]  ;;  %v350_v12 = vld [vmem:[%s2380_s19 + $0x10] sm:$0xf]  ;;  %vm2502_vm14 = vmor %vm540_vm12, %vm541_vm13 }
  0x13   : > { %v281_v13 = vrot.slane %v279_v3, 4  ;;  %v2399_v14 = vrot.slane %v380_v6, 5  ;;  %v386_v15 = vrot.slane %v384_v7, 4  ;;  %v692_v16 = vld [vmem:[%s2380_s19 + $0x60] sm:$0xf]  ;;  %v284_v19 = vrot.slane %v282_v4, 4  ;;  %vm2527_vm1 = vmor %vm1217_vm15, %vm1218_vm0 }
  0x14   : > { %v392_v17 = vrot.slane %v390_v9, 5  ;;  %v396_v18 = vrot.slane %v394_v10, 4  ;;  %v693_v20 = vld [vmem:[%s2380_s19 + $0x64] sm:$0xf]  ;;  %v285_v23 = vrot.slane %v2394_v11, 5  ;;  %v724_v24 = vshrl.u32 %v692_v16, 16 }
  0x15   : > { %v283_v21 = vsel %vm2389_vm4, %v281_v13, %v282_v4  ;;  %v387_v22 = vor.u32 %v386_v15, %v2399_v14  ;;  %v400_v27 = vshll.u32 %v350_v12, 16  ;;  %v727_v28 = vshll.u32 %v692_v16, 16  ;;  %v694_v33 = vld [vmem:[%s2380_s19 + $0x68] sm:$0xf]  ;;  %v2416_v35 = vld [vmem:[%s2380_s19 + $0x8c] sm:$0xf] }
  0x16   : > { %309 = vrot.lane.b32.xlu0 %v283_v21, %s2333_s20  ;;  %v397_v26 = vor.u32 %v396_v18, %v392_v17  ;;  %v726_v30 = vrot.slane %v724_v24, 6  ;;  %v734_v31 = vshrl.u32 %v693_v20, 16  ;;  %v737_v32 = vshll.u32 %v693_v20, 16  ;;  %v597_v38 = vld [vmem:[%s2380_s19 + $0x90] sm:$0xf] }
  0x17   : > { %v388_v29 = vrot.slane %v387_v22, 4  ;;  %v729_v34 = vrot.slane %v727_v28, 7  ;;  %v286_v37 = vsel %vm2389_vm4, %v284_v19, %v285_v23  ;;  %v402_v40 = vrot.slane %v400_v27, 5  ;;  %v2439_v53 = vld [vmem:[%s2380_s19 + $0x94] sm:$0xf] }
  0x18   : > { %v398_v39 = vrot.slane %v397_v26, 4  ;;  %v744_v41 = vshrl.u32 %v694_v33, 16  ;;  %v747_v42 = vshll.u32 %v694_v33, 16  ;;  %v736_v44 = vrot.slane %v734_v31, 6  ;;  %v254_v59 = vld [vmem:[%s2380_s19 + $0x40] sm:$0xf] }
  0x19   : > { %v393_v36 = vsel %vm2410_vm5, %v388_v29, %v392_v17  ;;  %v2426_v43 = vor.u32 %v729_v34, %v726_v30  ;;  %v739_v45 = vrot.slane %v737_v32, 7  ;;  %v624_v46 = vrot.slane %v2416_v35, 7  ;;  %v351_v62 = vld [vmem:[%s2380_s19 + $0x14] sm:$0xf]  ;;  %v2459_v6 = vld [vmem:[%s2380_s19 + $0x44] sm:$0xf] }
  0x1a   : > { %468 = vrot.lane.b32.xlu1 %v393_v36, %s2334_s21  ;;  %v627_v48 = vrot.slane %v597_v38, 7  ;;  %v403_v50 = vsel %vm2410_vm5, %v398_v39, %v402_v40  ;;  %v404_v51 = vshrl.u32 %v350_v12, 16  ;;  %v746_v52 = vrot.slane %v744_v41, 6  ;;  %v2471_v17 = vld [vmem:[%s2380_s19 + $0x38] sm:$0xf] }
  0x1b   : > { %v626_v49 = vrot.slane %v624_v46, 4  ;;  %v732_v54 = vrot.slane %v2426_v43, 4  ;;  %v740_v55 = vor.u32 %v739_v45, %v736_v44  ;;  %v749_v56 = vrot.slane %v747_v42, 7  ;;  %v1209_v18 = vld [vmem:[%s2380_s19 + $0x10] sm:$0xf] }
  0x1c   : > { %v629_v60 = vrot.slane %v627_v48, 4  ;;  %v630_v61 = vrot.slane %v2439_v53, 7  ;;  %v406_v63 = vrot.slane %v404_v51, 4  ;;  %v288_v5 = vrot.slane %v254_v59, 5  ;;  %v2480_v26 = vld [vmem:[%s2380_s19 + $0x18] sm:$0xf] }
  0x1d   : > { %v628_v57 = vsel %vm2429_vm8, %v626_v49, %v627_v48  ;;  %v741_v1 = vsel %vm2445_vm11, %v732_v54, %v740_v55  ;;  %v742_v2 = vrot.slane %v740_v55, 4  ;;  %v2456_v4 = vor.u32 %v749_v56, %v746_v52  ;;  %v1208_v27 = vld [vmem:[%s2380_s19 + $0xc] sm:$0xf]  ;;  %v1116_v29 = vld [vmem:[%s2380_s19 + $0x3c] sm:$0xf] }
  0x1e   : > { %311 = vrot.lane.b32.xlu0 %v286_v37, %s2333_s20  ;;  %654 = vrot.lane.b32.xlu2 %v628_v57, %s2333_s20  ;;  %v410_v7 = vshll.u32 %v351_v62, 16  ;;  %v414_v9 = vshrl.u32 %v351_v62, 16  ;;  %v631_v10 = vsel %vm2429_vm8, %v629_v60, %v630_v61  ;;  %v407_v12 = vor.u32 %v406_v63, %v402_v40  ;;  %v2498_v40 = vld [vmem:[%s2380_s19 + $0x40] sm:$0xf]  ;;  %v695_v62 = vld [vmem:[%s2380_s19 + $0x6c] sm:$0xf] }
  0x1f   : > { %v751_v13 = vsel %vm2445_vm11, %v742_v2, %v2456_v4  ;;  %v290_v15 = vrot.slane %v288_v5, 4  ;;  %v291_v16 = vrot.slane %v2459_v6, 5  ;;  %v287_v19 = vrot.slane %v285_v23, 4  ;;  %v1210_v23 = vld [vmem:[%s2380_s19 + $0x14] sm:$0xf] }
  0x20   : > { %v412_v20 = vrot.slane %v410_v7, 5  ;;  %v416_v21 = vrot.slane %v414_v9, 4  ;;  %v408_v22 = vrot.slane %v407_v12, 4  ;;  %v1140_v24 = vrot.slane %v2471_v17, 6  ;;  %v230_v0 = vld [vmem:[%s2380_s19 + $0x8] sm:$0xf] }
  0x21   : > { %v292_v28 = vsel %vm2389_vm4, %v290_v15, %v291_v16  ;;  %v1250_v30 = vshrl.u32 %v1209_v18, 16  ;;  %v1253_v11 = vshll.u32 %v1209_v18, 16  ;;  %v289_v31 = vsel %vm2389_vm4, %v287_v19, %v288_v5  ;;  %v696_v15 = vld [vmem:[%s2380_s19 + $0x70] sm:$0xf]  ;;  %241 = vst.msk [vmem:[#allocation2 + $0x8] sm:$0xf] %vm238_vm2, %v230_v0 }
  0x22   : > { %470 = vrot.lane.b32.xlu1 %v403_v50, %s2334_s21  ;;  %v417_v32 = vor.u32 %v416_v21, %v412_v20  ;;  %v420_v33 = vshll.u32 %v2480_v26, 16  ;;  %v1240_v34 = vshrl.u32 %v1208_v27, 16  ;;  %v1243_v36 = vshll.u32 %v1208_v27, 16  ;;  %v232_v25 = vld [vmem:[%s2380_s19 + $0x10] sm:$0xf] }
  0x23   : > { %v413_v37 = vsel %vm2410_vm5, %v408_v22, %v412_v20  ;;  %v1142_v38 = vrot.slane %v1140_v24, 4  ;;  %v1143_v39 = vrot.slane %v1116_v29, 6  ;;  %v1252_v41 = vrot.slane %v1250_v30, 5  ;;  %243 = vst.msk [vmem:[#allocation2 + $0x10] sm:$0xf] %vm238_vm2, %v232_v25 }
  0x24   : > { %v1255_v42 = vrot.slane %v1253_v11, 6  ;;  %v1260_v44 = vshrl.u32 %v1210_v23, 16  ;;  %v1263_v45 = vshll.u32 %v1210_v23, 16  ;;  %v418_v49 = vrot.slane %v417_v32, 4 }
  0x25   : > { %v2507_v50 = vrot.slane %v420_v33, 5  ;;  %v1242_v51 = vrot.slane %v1240_v34, 5  ;;  %v1245_v52 = vrot.slane %v1243_v36, 6  ;;  %v1145_v54 = vrot.slane %v1143_v39, 4  ;;  %v256_v34 = vld [vmem:[%s2380_s19 + $0x48] sm:$0xf] }
  0x26   : > { %816 = vrot.lane.b32.xlu0 %v741_v1, %s2334_s21  ;;  %656 = vrot.lane.b32.xlu2 %v631_v10, %s2333_s20  ;;  %v1146_v55 = vrot.slane %v2498_v40, 6  ;;  %v1144_v56 = vsel %vm2502_vm14, %v1142_v38, %v1143_v39  ;;  %v1256_v57 = vor.u32 %v1255_v42, %v1252_v41  ;;  %v1262_v59 = vrot.slane %v1260_v44, 5  ;;  %v599_v10 = vld [vmem:[%s2380_s19 + $0x98] sm:$0xf]  ;;  %v353_v44 = vld [vmem:[%s2380_s19 + $0x1c] sm:$0xf] }
  0x27   : > { %v1265_v60 = vrot.slane %v1263_v45, 6  ;;  %v423_v63 = vsel %vm2410_vm5, %v418_v49, %v2507_v50  ;;  %v2517_v1 = vor.u32 %v1245_v52, %v1242_v51  ;;  %v754_v2 = vshrl.u32 %v695_v62, 16 }
  0x28   : > { %v1147_v5 = vsel %vm2502_vm14, %v1145_v54, %v1146_v55  ;;  %v1258_v7 = vrot.slane %v1256_v57, 4  ;;  %v757_v12 = vshll.u32 %v695_v62, 16  ;;  %v632_v19 = vrot.slane %v630_v61, 4  ;;  %v2547_v61 = vld [vmem:[%s2380_s19 + $0x9c] sm:$0xf] }
  0x29   : > { %v2524_v9 = vor.u32 %v1265_v60, %v1262_v59  ;;  %v1248_v18 = vrot.slane %v2517_v1, 4  ;;  %v633_v20 = vrot.slane %v599_v10, 7  ;;  %v756_v21 = vrot.slane %v754_v2, 6  ;;  %v1211_v59 = vld [vmem:[%s2380_s19 + $0x18] sm:$0xf] }
  0x2a   : > { %818 = vrot.lane.b32.xlu1 %v751_v13, %s2334_s21  ;;  %v759_v27 = vrot.slane %v757_v12, 7  ;;  %v767_v29 = vshll.u32 %v696_v15, 16  ;;  %v752_v53 = vrot.slane %v2456_v4, 4  ;;  %v294_v38 = vrot.slane %v256_v34, 5  ;;  %v1118_v12 = vld [vmem:[%s2380_s19 + $0x44] sm:$0xf] }
  0x2b   : > { %v1267_v22 = vsel %vm2527_vm1, %v1258_v7, %v2524_v9  ;;  %v1257_v30 = vsel %vm2527_vm1, %v1248_v18, %v1256_v57  ;;  %v634_v11 = vsel %vm2429_vm8, %v632_v19, %v633_v20  ;;  %v635_v36 = vrot.slane %v633_v20, 4  ;;  %v525_v13 = vld [vmem:[%s2380_s19 + $0x74] sm:$0xf] }
  0x2c   : > { %v760_v23 = vor.u32 %v759_v27, %v756_v21  ;;  %v769_v33 = vrot.slane %v767_v29, 7  ;;  %v434_v45 = vshrl.u32 %v353_v44, 16  ;;  %v296_v51 = vrot.slane %v294_v38, 4 }
  0x2d   : > { %v430_v57 = vshll.u32 %v353_v44, 16  ;;  %v293_v60 = vrot.slane %v291_v16, 4  ;;  %v1273_v2 = vshll.u32 %v1211_v59, 16  ;;  %v1148_v19 = vrot.slane %v1146_v55, 4 }
  0x2e   : > { %315 = vrot.lane.b32.xlu0 %v292_v28, %s2333_s20  ;;  %313 = vrot.lane.b32.xlu2 %v289_v31, %s2333_s20  ;;  %v764_v28 = vshrl.u32 %v696_v15, 16  ;;  %v424_v31 = vshrl.u32 %v2480_v26, 16  ;;  %v761_v4 = vsel %vm2445_vm11, %v752_v53, %v760_v23  ;;  %v762_v39 = vrot.slane %v760_v23, 4  ;;  %v2559_v26 = vld [vmem:[%s2380_s19 + $0x4c] sm:$0xf] }
  0x2f   : > { %v297_v54 = vrot.slane %v2559_v26, 5  ;;  %v436_v62 = vrot.slane %v434_v45, 4  ;;  %v432_v10 = vrot.slane %v430_v57, 5  ;;  %v1212_v15 = vld [vmem:[%s2380_s19 + $0x1c] sm:$0xf]  ;;  %v295_v6 = vsel %vm2389_vm4, %v293_v60, %v294_v38 }
  0x30   : > { %v766_v32 = vrot.slane %v764_v28, 6  ;;  %v426_v42 = vrot.slane %v424_v31, 4  ;;  %v1149_v20 = vrot.slane %v1118_v12, 6  ;;  %v2595_v28 = vld [vmem:[%s2380_s19 + $0x48] sm:$0xf]  ;;  %v1280_v29 = vshrl.u32 %v1212_v15, 16 }
  0x31   : > { %v437_v16 = vor.u32 %v436_v62, %v432_v10  ;;  %v1152_v31 = vrot.slane %v2595_v28, 6  ;;  %v249_v57 = vld [vmem:[%s2380_s19 + $0x2c] sm:$0xe]  ;;  %v1268_v60 = vrot.slane %v2524_v9, 4  ;;  %vm900_vm7 = vcmask 195584  }
  0x32   : > { %472 = vrot.lane.b32.xlu1 %v413_v37, %s2334_s21  ;;  %v636_v37 = vrot.slane %v2547_v61, 7  ;;  %v2556_v41 = vor.u32 %v769_v33, %v766_v32  ;;  %v1150_v40 = vsel %vm2502_vm14, %v1148_v19, %v1149_v20  ;;  %v1151_v55 = vrot.slane %v1149_v20, 4 }
  0x33   : > { %v438_v53 = vrot.slane %v437_v16, 4  ;;  %v1282_v33 = vrot.slane %v1280_v29, 5  ;;  %v601_v16 = vld [vmem:[%s2380_s19 + $0xa0] sm:$0xf] }
  0x34   : > { %v637_v49 = vsel %vm2429_vm8, %v635_v36, %v636_v37  ;;  %v771_v52 = vsel %vm2445_vm11, %v762_v39, %v2556_v41  ;;  %v347_v36 = vld [vmem:[%s2380_s19 + $0x4] sm:$0xf] }
  0x35   : > { %v370_v44 = vshll.u32 %v347_v36, 16  ;;  %v374_v45 = vshrl.u32 %v347_v36, 16  ;;  %v355_v36 = vld [vmem:[%s2380_s19 + $0x24] sm:$0xf] }
  0x36   : > { %1170 = vrot.lane.b32.xlu0 %v1144_v56, %s2333_s20  ;;  %474 = vrot.lane.b32.xlu2 %v423_v63, %s2334_s21  ;;  %v427_v56 = vor.u32 %v426_v42, %v2507_v50  ;;  %v1270_v63 = vshrl.u32 %v1211_v59, 16  ;;  %v298_v50 = vsel %vm2389_vm4, %v296_v51, %v297_v54  ;;  %v1153_v42 = vsel %vm2502_vm14, %v1151_v55, %v1152_v31  ;;  %v250_v59 = vld [vmem:[%s2380_s19 + $0x30] sm:$0xf] }
  0x37   : > { %v372_v62 = vrot.slane %v370_v44, 5  ;;  %v772_v44 = vrot.slane %v2556_v41, 4 }
  0x38   : > { %v428_v7 = vrot.slane %v427_v56, 4  ;;  %v1272_v21 = vrot.slane %v1270_v63, 5  ;;  %v376_v63 = vrot.slane %v374_v45, 4 }
  0x3a   : > { %1172 = vrot.lane.b32.xlu1 %v1147_v5, %s2333_s20  ;;  %v2578_v5 = vld [vmem:[%s2380_s19 + $0x20] sm:$0xf]  ;;  %v433_v27 = vsel %vm2410_vm5, %v428_v7, %v432_v10  ;;  %v276_v7 = vrot.slane %v250_v59, 5 }
  0x3b   : > { %v440_v18 = vshll.u32 %v2578_v5, 16  ;;  %v444_v45 = vshrl.u32 %v2578_v5, 16  ;;  %v690_v5 = vld [vmem:[%s2380_s19 + $0x58] sm:$0xc] }
  0x3c   : > { %v278_v19 = vrot.slane %v276_v7, 4 }
  0x3d   : > { %v2599_v23 = vrot.slane %v440_v18, 5  ;;  %v697_v18 = vld [vmem:[%s2380_s19 + $0x74] sm:$0xf] }
  0x3e   : > { %1334 = vrot.lane.b32.xlu0 %v1267_v22, %s2334_s21  ;;  %1332 = vrot.lane.b32.xlu2 %v1257_v30, %s2334_s21  ;;  %v1275_v22 = vrot.slane %v1273_v2, 6  ;;  %v1283_v30 = vshll.u32 %v1212_v15, 16  ;;  %v377_v15 = vor.u32 %v376_v63, %v372_v62  ;;  %v777_v29 = vshll.u32 %v697_v18, 16  ;;  %v259_v63 = vld [vmem:[%s2380_s19 + $0x54] sm:$0x1] }
  0x3f   : > { %v443_v39 = vsel %vm2410_vm5, %v438_v53, %v2599_v23  ;;  %v303_v26 = vrot.slane %v259_v63, 5  ;;  %v1120_v63 = vld [vmem:[%s2380_s19 + $0x4c] sm:$0xf] }
  0x40   : > { %v1276_v32 = vor.u32 %v1275_v22, %v1272_v21  ;;  %v1285_v34 = vrot.slane %v1283_v30, 6  ;;  %v378_v20 = vrot.slane %v377_v15, 4  ;;  %v639_v22 = vrot.slane %v601_v16, 7  ;;  %v2636_v30 = vld [vmem:[%s2380_s19 + $0xa4] sm:$0xf] }
  0x41   : > { %v446_v15 = vrot.slane %v444_v45, 4  ;;  %v2706_v45 = vld [vmem:[%s3389_s1] sm:$0xff] }
  0x42   : > { %658 = vrot.lane.b32.xlu1 %v634_v11, %s2333_s20  ;;  %v346_v11 = vld [vmem:[%s2380_s19] sm:$0xf]  ;;  %v2614_v51 = vor.u32 %v1285_v34, %v1282_v33  ;;  %v1277_v12 = vsel %vm2527_vm1, %v1268_v60, %v1276_v32  ;;  %v383_v53 = vsel %vm2410_vm5, %v378_v20, %v2399_v14  ;;  %v641_v55 = vrot.slane %v639_v22, 4  ;;  %v507_v20 = vld [vmem:[%s3389_s1 + $0x8] sm:$0xf] }
  0x43   : > { %v361_v38 = vshrl.u32 %v346_v11, 16  ;;  %v779_v34 = vrot.slane %v777_v29, 7  ;;  %v450_v14 = vshll.u32 %v355_v36, 16 }
  0x45   : > { %v452_v60 = vrot.slane %v450_v14, 5 }
  0x46   : > { %820 = vrot.lane.b32.xlu0 %v761_v4, %s2334_s21  ;;  %660 = vrot.lane.b32.xlu2 %v637_v49, %s2333_s20  ;;  %v364_v4 = vshll.u32 %v346_v11, 16  ;;  %v1278_v49 = vrot.slane %v1276_v32, 4  ;;  %v280_v11 = vsel %vm2389_vm4, %v278_v19, %v279_v3  ;;  %v642_v32 = vrot.slane %v2636_v30, 7  ;;  %v691_v19 = vld [vmem:[%s2380_s19 + $0x5c] sm:$0xf] }
  0x47   : > { %v638_v3 = vrot.slane %v636_v37, 4  ;;  %v258_v37 = vld [vmem:[%s2380_s19 + $0x50] sm:$0xf] }
  0x48   : > { %v366_v56 = vrot.slane %v364_v4, 5  ;;  %v1287_v2 = vsel %vm2527_vm1, %v1278_v49, %v2614_v51  ;;  %v300_v59 = vrot.slane %v258_v37, 5 }
  0x49   : > { %v640_v49 = vsel %vm2429_vm8, %v638_v3, %v639_v22  ;;  %v447_v22 = vor.u32 %v446_v15, %v2599_v23  ;;  %v595_v3 = vld [vmem:[%s2380_s19 + $0x88] sm:$0xf] }
  0x4a   : > { %822 = vrot.lane.b32.xlu1 %v771_v52, %s2334_s21  ;;  %v363_v52 = vrot.slane %v361_v38, 4 }
  0x4c   : > { %v367_v10 = vor.u32 %v366_v56, %v363_v52 }
  0x4e   : > { %319 = vrot.lane.b32.xlu0 %v298_v50, %s2333_s20  ;;  %317 = vrot.lane.b32.xlu2 %v295_v6, %s2333_s20  ;;  %v2155_v50 = vrot.slane %v249_v57, 9  ;;  %v368_v6 = vrot.slane %v367_v10, 4  ;;  %v299_v57 = vrot.slane %v297_v54, 4 }
  0x50   : > { %v277_v9 = vsel %vm2389_vm4, %v2155_v50, %v276_v7  ;;  %v373_v21 = vsel %vm2410_vm5, %v368_v6, %v372_v62  ;;  %v302_v50 = vrot.slane %v300_v59, 4  ;;  %v705_v6 = vshrl.u32 %v690_v5, 16 }
  0x51   : > { %v301_v16 = vsel %vm2389_vm4, %v299_v57, %v300_v59 }
  0x52   : > { %476 = vrot.lane.b32.xlu1 %v433_v27, %s2334_s21  ;;  %v774_v27 = vshrl.u32 %v697_v18, 16  ;;  %v708_v18 = vshll.u32 %v690_v5, 16  ;;  %v304_v29 = vsel %vm2389_vm4, %v302_v50, %v303_v26 }
  0x54   : > { %v776_v33 = vrot.slane %v774_v27, 6  ;;  %v984_v27 = vunpack.c.l.b16 %v507_v20 }
  0x56   : > { %1174 = vrot.lane.b32.xlu0 %v1150_v40, %s2333_s20  ;;  %478 = vrot.lane.b32.xlu2 %v443_v39, %s2334_s21  ;;  %v698_v40 = vld [vmem:[%s2380_s19 + $0x78] sm:$0xf]  ;;  %v454_v39 = vshrl.u32 %v355_v36, 16  ;;  %v780_v61 = vor.u32 %v779_v34, %v776_v33  ;;  %v710_v33 = vrot.slane %v708_v18, 7  ;;  %v714_v34 = vshrl.u32 %v691_v19, 16 }
  0x57   : > { %v784_v38 = vshrl.u32 %v698_v40, 16  ;;  %v787_v4 = vshll.u32 %v698_v40, 16  ;;  %v707_v40 = vrot.slane %v705_v6, 6  ;;  %v717_v36 = vshll.u32 %v691_v19, 16  ;;  %v2731_v6 = vld [vmem:[%s2380_s19 + $0x50] sm:$0xf] }
  0x58   : > { %v456_v62 = vrot.slane %v454_v39, 4  ;;  %v781_v41 = vsel %vm2445_vm11, %v772_v44, %v780_v61  ;;  %v782_v7 = vrot.slane %v780_v61, 4  ;;  %v986_v0 = vpack.c.b16 %v984_v27, %v984_v27  ;;  %v2739_v18 = vld [vmem:[%s2380_s19 + $0x60] sm:$0xf]  ;;  %v699_v27 = vld [vmem:[%s2380_s19 + $0x7c] sm:$0xf] }
  0x59   : > { %v786_v52 = vrot.slane %v784_v38, 6  ;;  %v789_v56 = vrot.slane %v787_v4, 7  ;;  %v448_v38 = vrot.slane %v447_v22, 4  ;;  %v711_v44 = vor.u32 %v710_v33, %v707_v40 }
  0x5a   : > { %1176 = vrot.lane.b32.xlu1 %v1153_v42, %s2333_s20  ;;  %v643_v42 = vsel %vm2429_vm8, %v641_v55, %v642_v32  ;;  %v457_v54 = vor.u32 %v456_v62, %v452_v60  ;;  %v594_v55 = vld [vmem:[%s2380_s19 + $0x84] sm:$0x8]  ;;  %v2695_v23 = vsel %vm916_vm3, %v986_v0, 0  ;;  %v716_v61 = vrot.slane %v714_v34, 6  ;;  %v1213_v62 = vld [vmem:[%s2380_s19 + $0x20] sm:$0xf] }
  0x5b   : > { %v2673_v10 = vor.u32 %v789_v56, %v786_v52  ;;  %v2157_v14 = vrot.slane %v594_v55, 11  ;;  %2275 = vmatpush.bf16.msra.mxu1 %v2695_v23  ;;  %v719_v37 = vrot.slane %v717_v36, 7  ;;  %v2160_v52 = vld [vmem:[%s3389_s1 + $0x14] sm:$0xf]  ;;  %v712_v57 = vrot.slane %v711_v44, 4 }
  0x5c   : > { %v1290_v50 = vshrl.u32 %v1213_v62, 16  ;;  %v548_v40 = vrot.slane %v2739_v18, 6  ;;  %v1288_v55 = vrot.slane %v2614_v51, 4  ;;  %v603_v34 = vld [vmem:[%s2380_s19 + $0xa8] sm:$0xf]  ;;  %v797_v28 = vshll.u32 %v699_v27, 16 }
  0x5d   : > { %v720_v59 = vor.u32 %v719_v37, %v716_v61  ;;  %v700_v0 = vld [vmem:[%s2380_s19 + $0x80] sm:$0x7]  ;;  %v645_v44 = vrot.slane %v603_v34, 7  ;;  %v792_v47 = vrot.slane %v2673_v10, 4 }
  0x5e   : > { %1338 = vrot.lane.b32.xlu0 %v1287_v2, %s2334_s21  ;;  %1336 = vrot.lane.b32.xlu2 %v1277_v12, %s2334_s21  ;;  %v356_v2 = vld [vmem:[%s2380_s19 + $0x28] sm:$0x1]  ;;  %v231_v12 = vld [vmem:[%s2380_s19 + $0xc] sm:$0xf]  ;;  %v1292_v19 = vrot.slane %v1290_v50, 5 }
  0x5f   : > { %242 = vst.msk [vmem:[#allocation2 + $0xc] sm:$0xf] %vm238_vm2, %v231_v12  ;;  %2276 = vmatpush.bf16.msra.mxu1 %v2706_v45  ;;  %v721_v15 = vsel %vm2445_vm11, %v712_v57, %v720_v59  ;;  %v722_v26 = vrot.slane %v720_v59, 4  ;;  %v799_v57 = vrot.slane %v797_v28, 7  ;;  %v807_v59 = vshll.u32 %v700_v0, 16 }
  0x60   : > { %v2827_v28 = vld [vmem:[%s2380_s19 + $0x10] sm:$0xf] }
  0x61   : > { %v731_v35 = vsel %vm2445_vm11, %v722_v26, %v2426_v43  ;;  %v1154_v43 = vrot.slane %v1152_v31, 4 }
  0x62   : > { %305 = vrot.lane.b32.xlu1 %v277_v9, %s2333_s20  ;;  %v460_v9 = vshll.u32 %v356_v2, 16  ;;  %v233_v2 = vld [vmem:[%s2380_s19 + $0x14] sm:$0xf] }
  0x63   : > { %244 = vst.msk [vmem:[#allocation2 + $0x14] sm:$0xf] %vm238_vm2, %v233_v2 }
  0x66   : > { %464 = vrot.lane.b32.xlu0 %v373_v21, %s2334_s21  ;;  %307 = vrot.lane.b32.xlu2 %v280_v11, %s2333_s20  ;;  %v791_v21 = vsel %vm2445_vm11, %v782_v7, %v2673_v10  ;;  %v458_v11 = vrot.slane %v457_v54, 4  ;;  %v1293_v7 = vshll.u32 %v1213_v62, 16  ;;  %v1155_v54 = vrot.slane %v1120_v63, 6  ;;  %v1215_v63 = vld [vmem:[%s2380_s19 + $0x28] sm:$0xf] }
  0x68   : > { %v1295_v20 = vrot.slane %v1293_v7, 6  ;;  %v1157_v22 = vrot.slane %v1155_v54, 4  ;;  %v1156_v61 = vsel %vm2502_vm14, %v1154_v43, %v1155_v54  ;;  %v2795_v54 = vld [vmem:[%s2380_s19 + $0x68] sm:$0xf]  ;;  %v2816_v43 = vld [vmem:[%s3389_s1 + $0x18] sm:$0xff] }
  0x6a   : > { %466 = vrot.lane.b32.xlu1 %v383_v53, %s2334_s21  ;;  %v462_v53 = vrot.slane %v460_v9, 5  ;;  %v1296_v33 = vor.u32 %v1295_v20, %v1292_v19  ;;  %v1310_v20 = vshrl.u32 %v1215_v63, 16 }
  0x6c   : > { %v463_v4 = vsel %vm2410_vm5, %v458_v11, %v462_v53  ;;  %v1214_v11 = vld [vmem:[%s2380_s19 + $0x24] sm:$0xf]  ;;  %v1297_v37 = vsel %vm2527_vm1, %v1288_v55, %v1296_v33  ;;  %v1298_v2 = vrot.slane %v1296_v33, 4  ;;  %v554_v33 = vrot.slane %v2795_v54, 6 }
  0x6d   : > { %v2753_v53 = vld [vmem:[%s2380_s19 + $0x64] sm:$0xf]  ;;  %v1300_v31 = vshrl.u32 %v1214_v11, 16 }
  0x6e   : > { %664 = vrot.lane.b32.xlu0 %v643_v42, %s2333_s20  ;;  %662 = vrot.lane.b32.xlu2 %v640_v49, %s2333_s20  ;;  %v621_v42 = vrot.slane %v595_v3, 7  ;;  %v453_v49 = vsel %vm2410_vm5, %v448_v38, %v452_v60  ;;  %vm335_vm5 = vcmask 126016   ;;  %v794_v3 = vshrl.u32 %v699_v27, 16  ;;  %v1216_v27 = vld [vmem:[%s2380_s19 + $0x2c] sm:$0x3] }
  0x6f   : > { %v551_v51 = vrot.slane %v2753_v53, 6  ;;  %v1302_v62 = vrot.slane %v1300_v31, 5 }
  0x70   : > { %v622_v56 = vsel %vm2429_vm8, %v2157_v14, %v621_v42  ;;  %v623_v60 = vrot.slane %v621_v42, 4  ;;  %v550_v42 = vrot.slane %v548_v40, 4 }
  0x71   : > { %v553_v55 = vrot.slane %v551_v51, 4 }
  0x72   : > { %824 = vrot.lane.b32.xlu1 %v781_v41, %s2334_s21  ;;  %v896_v41 = vunpack.c.l.b16 %v2160_v52  ;;  %v796_v52 = vrot.slane %v794_v3, 6  ;;  %v1122_v3 = vld [vmem:[%s2380_s19 + $0x54] sm:$0xf] }
  0x74   : > { %v898_v5 = vpack.c.b16 %v896_v41, %v896_v41 }
  0x76   : > { %321 = vrot.lane.b32.xlu0 %v301_v16, %s2333_s20  ;;  %826 = vrot.lane.b32.xlu2 %v791_v21, %s2334_s21  ;;  %v918_v9 = vsel %vm916_vm3, %v898_v5, 0  ;;  %v625_v16 = vsel %vm2429_vm8, %v623_v60, %v624_v46  ;;  %v2261_v21 = vld [vmem:[%s3389_s1 + $0xc] sm:$0xff]  ;;  %v1158_v46 = vrot.slane %v2731_v6, 6  ;;  %v552_v60 = vsel %vm2502_vm14, %v550_v42, %v551_v51  ;;  %v234_v42 = vld [vmem:[%s2380_s19 + $0x18] sm:$0xf] }
  0x77   : > { %2273 = vmatpush.bf16.msra.mxu3 %v918_v9  ;;  %926 = vmatpush.bf16.msra.mxu0 %v918_v9  ;;  %v647_v5 = vrot.slane %v645_v44, 4  ;;  %v800_v9 = vor.u32 %v799_v57, %v796_v52  ;;  %v1320_v51 = vshrl.u32 %v1216_v27, 16  ;;  %245 = vst.msk [vmem:[#allocation2 + $0x18] sm:$0xf] %vm238_vm2, %v234_v42  ;;  %v1070_v57 = vrot.slane %v2827_v28, 5 }
  0x78   : > { %v2700_v39 = vpop.permute.xlu2 %654  ;;  %v1159_v38 = vsel %vm2502_vm14, %v1157_v22, %v1158_v46  ;;  %v1313_v22 = vshll.u32 %v1215_v63, 16  ;;  %v1160_v10 = vrot.slane %v1158_v46, 4  ;;  %v1207_v46 = vld [vmem:[%s2380_s19 + $0x8] sm:$0xf] }
  0x79   : > { %v801_v6 = vsel %vm2445_vm11, %v792_v47, %v800_v9  ;;  %v556_v47 = vrot.slane %v554_v33, 4 }
  0x7a   : > { %323 = vrot.lane.b32.xlu1 %v304_v29, %s2333_s20 }
  0x7b   : > { %2274 = vmatpush.bf16.msra.mxu3 %v2261_v21  ;;  %927 = vmatpush.bf16.msra.mxu0 %v2261_v21 }
  0x7e   : > { %482 = vrot.lane.b32.xlu0 %v463_v4, %s2334_s21  ;;  %480 = vrot.lane.b32.xlu2 %v453_v49, %s2334_s21  ;;  %v1303_v4 = vshll.u32 %v1214_v11, 16  ;;  %v604_v49 = vld [vmem:[%s2380_s19 + $0xac] sm:$0x7] }
  0x7f   : > { %1012 = vmatpush.bf16.msrb.mxu0 %v2695_v23  ;;  %v644_v23 = vrot.slane %v642_v32, 4  ;;  %v2223_v32 = vld [vmem:[%s3389_s1 + $0x20] sm:$0xf]  ;;  %v648_v50 = vrot.slane %v604_v49, 7  ;;  %v2807_v11 = vld [vmem:[%s2380_s19 + $0xc] sm:$0xf] }
  0x80   : > { %v2724_v12 = vpop.permute.xlu2 %656  ;;  %v1305_v30 = vrot.slane %v1303_v4, 6  ;;  %v1412_v25 = vunpack.c.l.b16 %v2223_v32  ;;  %v1067_v31 = vrot.slane %v2807_v11, 5  ;;  %v1315_v4 = vrot.slane %v1313_v22, 6  ;;  %v1206_v49 = vld [vmem:[%s2380_s19 + $0x4] sm:$0xe] }
  0x81   : > { %v649_v34 = vsel %vm2429_vm8, %v647_v5, %v648_v50  ;;  %v1221_v63 = vshrl.u32 %v1206_v49, 16  ;;  %v2864_v5 = vld [vmem:[%s2380_s19 + $0x70] sm:$0xf] }
  0x82   : > { %650 = vrot.lane.b32.xlu1 %v622_v56, %s2333_s20  ;;  %v804_v56 = vshrl.u32 %v700_v0, 16  ;;  %v1414_v26 = vpack.c.b16 %v1412_v25, %v1412_v25  ;;  %v2797_v19 = vor.u32 %v1305_v30, %v1302_v62  ;;  %v2852_v62 = vld [vmem:[%s2380_s19 + $0x6c] sm:$0xf]  ;;  %v1322_v30 = vrot.slane %v1320_v51, 5 }
  0x83   : > { %1013 = vmatpush.bf16.msrb.mxu0 %v2706_v45  ;;  %v646_v45 = vsel %vm2429_vm8, %v644_v23, %v645_v44  ;;  %v555_v44 = vsel %vm2502_vm14, %v553_v55, %v554_v33  ;;  %v1224_v25 = vshll.u32 %v1206_v49, 16  ;;  %v1072_v51 = vrot.slane %v1070_v57, 4 }
  0x84   : > { %v806_v7 = vrot.slane %v804_v56, 6  ;;  %v1307_v53 = vsel %vm2527_vm1, %v1298_v2, %v2797_v19  ;;  %v1069_v56 = vrot.slane %v1067_v31, 4  ;;  %v1308_v50 = vrot.slane %v2797_v19, 4 }
  0x85   : > { %v1226_v55 = vrot.slane %v1224_v25, 6 }
  0x86   : > { %812 = vrot.lane.b32.xlu0 %v721_v15, %s2334_s21  ;;  %652 = vrot.lane.b32.xlu2 %v625_v16, %s2333_s20  ;;  %v809_v16 = vrot.slane %v807_v59, 7 }
  0x88   : > { %v310_v29 = vpop.permute.xlu0 %309  ;;  %v314_v36 = vpop.permute.xlu2 %313  ;;  %v810_v0 = vor.u32 %v809_v16, %v806_v7  ;;  %v2868_v7 = vld [vmem:[%s2380_s19 + $0x34] sm:$0xf]  ;;  %v1071_v16 = vsel %vm2389_vm4, %v1069_v56, %v1070_v57 }
  0x89   : > { %338 = vst.msk [vmem:[#allocation2 + $0x8] sm:$0xf] %vm335_vm5, %v310_v29  ;;  %v2803_v29 = vsel %vm916_vm3, %v1414_v26, 0 }
  0x8a   : > { %814 = vrot.lane.b32.xlu1 %v731_v35, %s2334_s21  ;;  %340 = vst.msk [vmem:[#allocation2 + $0x10] sm:$0xf] %vm335_vm5, %v314_v36  ;;  %2277 = vmatpush.bf16.msra.mxu2 %v2803_v29  ;;  %v802_v36 = vrot.slane %v800_v9, 4  ;;  %v557_v9 = vrot.slane %v2852_v62, 6 }
  0x8c   : > { %v469_v14 = vpop.permute.xlu1 %468  ;;  %v559_v28 = vrot.slane %v557_v9, 4 }
  0x8d   : > { %497 = vst.msk [vmem:[#allocation2 + $0x8] sm:$0xf] %vm494_vm6, %v469_v14  ;;  %v1323_v14 = vshll.u32 %v1216_v27, 16  ;;  %v1137_v27 = vrot.slane %v2868_v7, 6 }
  0x8e   : > { %1180 = vrot.lane.b32.xlu0 %v1159_v38, %s2333_s20  ;;  %1178 = vrot.lane.b32.xlu2 %v1156_v61, %s2333_s20  ;;  %v811_v61 = vsel %vm2445_vm11, %v802_v36, %v810_v0 }
  0x8f   : > { %2278 = vmatpush.bf16.msra.mxu2 %v2816_v43  ;;  %v1325_v32 = vrot.slane %v1323_v14, 6 }
  0x90   : > { %v312_v41 = vpop.permute.xlu0 %311  ;;  %v2792_v15 = vpop.permute.xlu2 %474 }
  0x91   : > { %339 = vst.msk [vmem:[#allocation2 + $0xc] sm:$0xf] %vm335_vm5, %v312_v41  ;;  %v1326_v19 = vor.u32 %v1325_v32, %v1322_v30  ;;  %v558_v30 = vsel %vm2502_vm14, %v556_v47, %v557_v9 }
  0x92   : > { %1340 = vrot.lane.b32.xlu1 %v1297_v37, %s2334_s21  ;;  %v1161_v37 = vrot.slane %v1122_v3, 6 }
  0x94   : > { %v2799_v21 = vld [vmem:[#allocation2 + $0x8] sm:$0xf]  ;;  %v471_v35 = vpop.permute.xlu1 %470  ;;  %v1162_v2 = vsel %vm2502_vm14, %v1160_v10, %v1161_v37  ;;  %v1163_v22 = vrot.slane %v1161_v37, 4 }
  0x95   : > { %586 = vst.msk [vmem:[#allocation2 + $0x8] sm:$0xf] %vm238_vm2, %v552_v60  ;;  %v1123_v60 = vld [vmem:[%s2380_s19 + $0x58] sm:$0x3] }
  0x96   : > { %682 = vst.msk [vmem:[#allocation2 + $0x8] sm:$0xf] %vm335_vm5, %v2700_v39  ;;  %666 = vrot.lane.b32.xlu0 %v646_v45, %s2333_s20  ;;  %v1312_v39 = vrot.slane %v1310_v20, 5  ;;  %1342 = vrot.lane.b32.xlu2 %v1307_v53, %s2334_s21  ;;  %v1223_v53 = vrot.slane %v1221_v63, 5 }
  0x97   : > { %498 = vst.msk [vmem:[#allocation2 + $0xc] sm:$0xf] %vm494_vm6, %v471_v35  ;;  %v1230_v35 = vshrl.u32 %v1207_v46, 16 }
  0x98   : > { %v817_v38 = vpop.permute.xlu0 %816  ;;  %v2836_v23 = vpop.permute.xlu2 %1332  ;;  %v1316_v59 = vor.u32 %v1315_v4, %v1312_v39  ;;  %v560_v39 = vrot.slane %v2864_v5, 6  ;;  %v1227_v10 = vor.u32 %v1226_v55, %v1223_v53  ;;  %v563_v53 = vrot.slane %v525_v13, 6 }
  0x99   : > { %844 = vst.msk [vmem:[#allocation2 + $0x8] sm:$0xf] %vm494_vm6, %v817_v38  ;;  %v235_v38 = vld [vmem:[%s2380_s19 + $0x1c] sm:$0xf]  ;;  %v1232_v37 = vrot.slane %v1230_v35, 5 }
  0x9a   : > { %668 = vrot.lane.b32.xlu1 %v649_v34, %s2333_s20  ;;  %v1318_v20 = vrot.slane %v1316_v59, 4  ;;  %v1233_v34 = vshll.u32 %v1207_v46, 16  ;;  %v1317_v3 = vsel %vm2527_vm1, %v1308_v50, %v1316_v59  ;;  %246 = vst.msk [vmem:[#allocation2 + $0x1c] sm:$0xf] %vm238_vm2, %v235_v38  ;;  %v1228_v46 = vrot.slane %v1227_v10, 4 }
  0x9b   : > { %v229_v50 = vld [vmem:[%s2380_s19 + $0x4] sm:$0xf]  ;;  %v565_v38 = vrot.slane %v563_v53, 4 }
  0x9c   : > { %v819_v52 = vpop.permute.xlu1 %818  ;;  %v1327_v42 = vsel %vm2527_vm1, %v1318_v20, %v1326_v19  ;;  %v1235_v49 = vrot.slane %v1233_v34, 6  ;;  %240 = vst.msk [vmem:[#allocation2 + $0x4] sm:$0xf] %vm238_vm2, %v229_v50  ;;  %v228_v20 = vld [vmem:[%s2380_s19] sm:$0xf] }
  0x9d   : > { %239 = vst.msk [vmem:[#allocation2] sm:$0xf] %vm238_vm2, %v228_v20 }
  0x9e   : > { %v2257_v41 = vld [vmem:[#allocation2 + $0x8] sm:$0xf0]  ;;  %830 = vrot.lane.b32.xlu0 %v811_v61, %s2334_s21  ;;  %828 = vrot.lane.b32.xlu2 %v801_v6, %s2334_s21  ;;  %v1139_v61 = vrot.slane %v1137_v27, 4 }
  0x9f   : > { %587 = vst.msk [vmem:[#allocation2 + $0xc] sm:$0xf] %vm238_vm2, %v555_v44  ;;  %v2197_v45 = vor.u32 %v2257_v41, %v2799_v21  ;;  %v2876_v21 = vld [vmem:[%s2380_s19 + $0x14] sm:$0xf]  ;;  %v1113_v44 = vld [vmem:[%s2380_s19 + $0x30] sm:$0xc]  ;;  %v1236_v41 = vor.u32 %v1235_v49, %v1232_v37 }
  0xa0   : > { %683 = vst.msk [vmem:[#allocation2 + $0xc] sm:$0xf] %vm335_vm5, %v2724_v12  ;;  %v316_v26 = vpop.permute.xlu0 %315  ;;  %v1164_v12 = vrot.slane %v1123_v60, 6  ;;  %v661_v36 = vpop.permute.xlu2 %660  ;;  %v2167_v0 = vld [vmem:[#allocation2 + $0x8] sm:$0xf]  ;;  %v1073_v14 = vrot.slane %v2876_v21, 5  ;;  %v1141_v6 = vsel %vm2502_vm14, %v1139_v61, %v1140_v24 }
  0xa1   : > { %845 = vst.msk [vmem:[#allocation2 + $0xc] sm:$0xf] %vm494_vm6, %v819_v52  ;;  %2215 = vmatmul.msk.bf16.vlgmr.msra.gmra.mxu1 %vm900_vm7, %v2197_v45  ;;  %v561_v52 = vsel %vm2502_vm14, %v559_v28, %v560_v39  ;;  %v2220_v59 = vrot.slane %v1113_v44, 10  ;;  %v1237_v17 = vsel %vm2527_vm1, %v1228_v46, %v1236_v41  ;;  %v1045_v45 = vld [vmem:[%s2380_s19 + $0x18] sm:$0xf] }
  0xa2   : > { %341 = vst.msk [vmem:[#allocation2 + $0x14] sm:$0xf] %vm335_vm5, %v316_v26  ;;  %1182 = vrot.lane.b32.xlu1 %v1162_v2, %s2333_s20  ;;  %v1074_v57 = vsel %vm2389_vm4, %v1072_v51, %v1073_v14  ;;  %v1238_v2 = vrot.slane %v1236_v41, 4  ;;  %v1075_v26 = vrot.slane %v1073_v14, 4  ;;  %v1076_v9 = vrot.slane %v1045_v45, 5 }
  0xa3   : > { %500 = vst.msk [vmem:[#allocation2 + $0x14] sm:$0xf] %vm494_vm6, %v2792_v15  ;;  %v1165_v15 = vsel %vm2502_vm14, %v1163_v22, %v1164_v12  ;;  %v1138_v60 = vsel %vm2502_vm14, %v2220_v59, %v1137_v27  ;;  %v236_v61 = vld [vmem:[%s2380_s19 + $0x20] sm:$0xf]  ;;  %v519_v59 = vld [vmem:[%s2380_s19 + $0x5c] sm:$0xf] }
  0xa4   : > { %v473_v4 = vpop.permute.xlu1 %472  ;;  %1105 = vst.msk [vmem:[#allocation2 + $0x8] sm:$0xf] %vm238_vm2, %v1071_v16  ;;  %v1247_v21 = vsel %vm2527_vm1, %v1238_v2, %v2517_v1  ;;  %v1077_v19 = vsel %vm2389_vm4, %v1075_v26, %v1076_v9  ;;  %v1046_v1 = vld [vmem:[%s2380_s19 + $0x1c] sm:$0xf]  ;;  %v1078_v55 = vrot.slane %v1076_v9, 4 }
  0xa5   : > { %499 = vst.msk [vmem:[#allocation2 + $0x10] sm:$0xf] %vm494_vm6, %v473_v4  ;;  %v1079_v34 = vrot.slane %v1046_v1, 5  ;;  %v3006_v9 = vld [vmem:[%s2380_s19 + $0x24] sm:$0xf] }
  0xa6   : > { %1344 = vrot.lane.b32.xlu0 %v1317_v3, %s2334_s21  ;;  %1184 = vrot.lane.b32.xlu2 %v1165_v15, %s2333_s20  ;;  %v562_v15 = vrot.slane %v560_v39, 4  ;;  %247 = vst.msk [vmem:[#allocation2 + $0x20] sm:$0xf] %vm238_vm2, %v236_v61 }
  0xa7   : > { %v1080_v4 = vsel %vm2389_vm4, %v1078_v55, %v1079_v34 }
  0xa8   : > { %v1171_v56 = vpop.permute.xlu0 %1170  ;;  %v2263_v54 = vld [vmem:[#allocation2 + $0x8] sm:$0xf0]  ;;  %v318_v32 = vpop.permute.xlu2 %317  ;;  %v564_v5 = vsel %vm2502_vm14, %v562_v15, %v563_v53  ;;  %v528_v53 = vld [vmem:[%s2380_s19 + $0x80] sm:$0x3] }
  0xa9   : > { %1198 = vst.msk [vmem:[#allocation2 + $0x8] sm:$0xf] %vm335_vm5, %v1171_v56  ;;  %v2168_v33 = vor.u32 %v2263_v54, %v2167_v0  ;;  %v2954_v0 = vld [vmem:[%s2380_s19 + $0x78] sm:$0xf] }
  0xaa   : > { %v2258_v62 = vld [vmem:[#allocation2 + $0x10] sm:$0xf0]  ;;  %1346 = vrot.lane.b32.xlu1 %v1327_v42, %s2334_s21  ;;  %1360 = vst.msk [vmem:[#allocation2 + $0x8] sm:$0xf] %vm494_vm6, %v2836_v23  ;;  %v566_v28 = vrot.slane %v2954_v0, 6  ;;  %v572_v0 = vrot.slane %v528_v53, 6 }
  0xab   : > { %589 = vst.msk [vmem:[#allocation2 + $0x14] sm:$0xf] %vm238_vm2, %v561_v52  ;;  %2186 = vmatmul.msk.bf16.vlgmr.msra.gmra.mxu3 %vm900_vm7, %v2168_v33  ;;  %v237_v52 = vld [vmem:[%s2380_s19 + $0x24] sm:$0xf] }
  0xac   : > { %v2200_v63 = vld [vmem:[#allocation2 + $0x10] sm:$0xf]  ;;  %v1173_v25 = vpop.permute.xlu1 %1172  ;;  %1106 = vst.msk [vmem:[#allocation2 + $0xc] sm:$0xf] %vm238_vm2, %v1074_v57  ;;  %v567_v47 = vsel %vm2502_vm14, %v565_v38, %v566_v28  ;;  %v518_v57 = vld [vmem:[%s2380_s19 + $0x58] sm:$0xc] }
  0xad   : > { %588 = vst.msk [vmem:[#allocation2 + $0x10] sm:$0xf] %vm238_vm2, %v558_v30  ;;  %v2201_v23 = vor.u32 %v2258_v62, %v2200_v63 }
  0xae   : > { %1199 = vst.msk [vmem:[#allocation2 + $0xc] sm:$0xf] %vm335_vm5, %v1173_v25  ;;  %1168 = vrot.lane.b32.xlu0 %v1141_v6, %s2333_s20  ;;  %1166 = vrot.lane.b32.xlu2 %v1138_v60, %s2333_s20  ;;  %v545_v6 = vrot.slane %v519_v59, 6 }
  0xaf   : > { %685 = vst.msk [vmem:[#allocation2 + $0x14] sm:$0xf] %vm335_vm5, %v661_v36 }
  0xb0   : > { %v1335_v24 = vpop.permute.xlu0 %1334  ;;  %342 = vst.msk [vmem:[#allocation2 + $0x18] sm:$0xf] %vm335_vm5, %v318_v32  ;;  %v479_v7 = vpop.permute.xlu2 %478  ;;  %v2156_v32 = vrot.slane %v518_v57, 10  ;;  %v547_v25 = vrot.slane %v545_v6, 4  ;;  %v1049_v57 = vld [vmem:[%s2380_s19 + $0x28] sm:$0xf] }
  0xb1   : > { %2216 = vmatmul.msk.bf16.gmra.mxu1 %vm900_vm7, %v2201_v23  ;;  %1361 = vst.msk [vmem:[#allocation2 + $0xc] sm:$0xf] %vm494_vm6, %v1335_v24  ;;  %v1081_v24 = vrot.slane %v1079_v34, 4 }
  0xb2   : > { %1328 = vrot.lane.b32.xlu1 %v1237_v17, %s2334_s21  ;;  %248 = vst.msk [vmem:[#allocation2 + $0x24] sm:$0xf] %vm238_vm2, %v237_v52  ;;  %v546_v63 = vsel %vm2502_vm14, %v2156_v32, %v545_v6  ;;  %v1047_v17 = vld [vmem:[%s2380_s19 + $0x20] sm:$0xf]  ;;  %v549_v45 = vsel %vm2502_vm14, %v547_v25, %v548_v40 }
  0xb3   : > { %v1082_v50 = vrot.slane %v1047_v17, 5 }
  0xb4   : > { %v659_v16 = vpop.permute.xlu1 %658 }
  0xb5   : > { %684 = vst.msk [vmem:[#allocation2 + $0x10] sm:$0xf] %vm335_vm5, %v659_v16  ;;  %v1083_v18 = vsel %vm2389_vm4, %v1081_v24, %v1082_v50  ;;  %v1084_v40 = vrot.slane %v1082_v50, 4  ;;  %v1085_v16 = vrot.slane %v3006_v9, 5  ;;  %v2335_v9 = vmov 0  }
  0xb6   : > { %1330 = vrot.lane.b32.xlu2 %v1247_v21, %s2334_s21  ;;  %v527_v21 = vld [vmem:[%s2380_s19 + $0x7c] sm:$0xf]  ;;  %1893 = vst [vmem:[%s3082_s10] sm:$0xf] %v2335_v9 }
  0xb7   : > { %2039 = vst [vmem:[%s3082_s10 + $0x30] sm:$0xf] %v2335_v9 }
  0xb8   : > { %v821_v35 = vpop.permute.xlu0 %820  ;;  %v2269_v22 = vld [vmem:[#allocation2 + $0x8] sm:$0xff]  ;;  %v1337_v12 = vpop.permute.xlu2 %1336  ;;  %2040 = vst [vmem:[%s3082_s10 + $0x34] sm:$0x3] %v2335_v9 }
  0xb9   : > { %846 = vst.msk [vmem:[#allocation2 + $0x10] sm:$0xf] %vm494_vm6, %v821_v35  ;;  %2249 = vmatmul.msk.bf16.vlgmr.msra.gmra.mxu2 %vm900_vm7, %v2269_v22  ;;  %v568_v35 = vrot.slane %v566_v28, 4  ;;  %v569_v22 = vrot.slane %v527_v21, 6 }
  0xba   : > { %1107 = vst.msk [vmem:[#allocation2 + $0x10] sm:$0xf] %vm238_vm2, %v1077_v19 }
  0xbb   : > { %v570_v1 = vsel %vm2502_vm14, %v568_v35, %v569_v22 }
  0xbc   : > { %v823_v27 = vpop.permute.xlu1 %822 }
  0xbd   : > { %847 = vst.msk [vmem:[#allocation2 + $0x14] sm:$0xf] %vm494_vm6, %v823_v27 }
  0xc0   : > { %v320_v36 = vpop.permute.xlu0 %319  ;;  %v308_v3 = vpop.permute.xlu2 %307 }
  0xc1   : > { %343 = vst.msk [vmem:[#allocation2 + $0x1c] sm:$0xf] %vm335_vm5, %v320_v36  ;;  %v571_v36 = vrot.slane %v569_v22, 4 }
  0xc2   : > { %502 = vst.msk [vmem:[#allocation2 + $0x1c] sm:$0xf] %vm494_vm6, %v479_v7 }
  0xc3   : > { %337 = vst.msk [vmem:[#allocation2 + $0x4] sm:$0xf] %vm335_vm5, %v308_v3  ;;  %v573_v28 = vsel %vm2502_vm14, %v571_v36, %v572_v0 }
  0xc4   : > { %v477_v51 = vpop.permute.xlu1 %476  ;;  %v2264_v14 = vld [vmem:[#allocation2 + $0x10] sm:$0xff] }
  0xc5   : > { %501 = vst.msk [vmem:[#allocation2 + $0x18] sm:$0xf] %vm494_vm6, %v477_v51  ;;  %2187 = vmatmul.msk.bf16.gmra.mxu3 %vm900_vm7, %v2264_v14 }
  0xc6   : > { %1108 = vst.msk [vmem:[#allocation2 + $0x14] sm:$0xf] %vm238_vm2, %v1080_v4 }
  0xc8   : > { %v1175_v42 = vpop.permute.xlu0 %1174  ;;  %v663_v39 = vpop.permute.xlu2 %662 }
  0xc9   : > { %v2259_v44 = vld [vmem:[#allocation2 + $0x18] sm:$0xf0]  ;;  %1200 = vst.msk [vmem:[#allocation2 + $0x10] sm:$0xf] %vm335_vm5, %v1175_v42  ;;  %v1041_v42 = vld [vmem:[%s2380_s19 + $0x8] sm:$0xf] }
  0xca   : > { %591 = vst.msk [vmem:[#allocation2 + $0x1c] sm:$0xf] %vm238_vm2, %v567_v47  ;;  %v1040_v47 = vld [vmem:[%s2380_s19 + $0x4] sm:$0xe] }
  0xcb   : > { %1362 = vst.msk [vmem:[#allocation2 + $0x10] sm:$0xf] %vm494_vm6, %v1337_v12  ;;  %v1086_v12 = vsel %vm2389_vm4, %v1084_v40, %v1085_v16  ;;  %v2219_v61 = vrot.slane %v1040_v47, 9 }
  0xcc   : > { %v2204_v10 = vld [vmem:[#allocation2 + $0x18] sm:$0xf]  ;;  %v1177_v37 = vpop.permute.xlu1 %1176 }
  0xcd   : > { %590 = vst.msk [vmem:[#allocation2 + $0x18] sm:$0xf] %vm238_vm2, %v564_v5  ;;  %v2205_v49 = vor.u32 %v2259_v44, %v2204_v10  ;;  %v1064_v5 = vrot.slane %v1041_v42, 5 }
  0xce   : > { %1201 = vst.msk [vmem:[#allocation2 + $0x14] sm:$0xf] %vm335_vm5, %v1177_v37 }
  0xcf   : > { %2217 = vmatmul.msk.bf16.gmra.mxu1 %vm900_vm7, %v2205_v49  ;;  %686 = vst.msk [vmem:[#allocation2 + $0x18] sm:$0xf] %vm335_vm5, %v663_v39  ;;  %v1065_v48 = vsel %vm2389_vm4, %v2219_v61, %v1064_v5  ;;  %v1066_v39 = vrot.slane %v1064_v5, 4 }
  0xd0   : > { %v1339_v56 = vpop.permute.xlu0 %1338  ;;  %v827_v54 = vpop.permute.xlu2 %826 }
  0xd1   : > { %1363 = vst.msk [vmem:[#allocation2 + $0x14] sm:$0xf] %vm494_vm6, %v1339_v56  ;;  %v1068_v49 = vsel %vm2389_vm4, %v1066_v39, %v1067_v31 }
  0xd4   : > { %v306_v33 = vpop.permute.xlu1 %305 }
  0xd5   : > { %336 = vst.msk [vmem:[#allocation2] sm:$0xf] %vm335_vm5, %v306_v33 }
  0xd8   : > { %v465_v62 = vpop.permute.xlu0 %464  ;;  %v2270_v30 = vld [vmem:[#allocation2 + $0x10] sm:$0xff]  ;;  %v481_v46 = vpop.permute.xlu2 %480 }
  0xd9   : > { %495 = vst.msk [vmem:[#allocation2] sm:$0xf] %vm494_vm6, %v465_v62  ;;  %2250 = vmatmul.msk.bf16.gmra.mxu2 %vm900_vm7, %v2270_v30  ;;  %v1088_v62 = vrot.slane %v1049_v57, 5  ;;  %v1087_v30 = vrot.slane %v1085_v16, 4 }
  0xdb   : > { %v1089_v25 = vsel %vm2389_vm4, %v1087_v30, %v1088_v62 }
  0xdc   : > { %v467_v41 = vpop.permute.xlu1 %466 }
  0xdd   : > { %496 = vst.msk [vmem:[#allocation2 + $0x4] sm:$0xf] %vm494_vm6, %v467_v41 }
  0xe0   : > { %v2993_v23 = vld [vmem:[#allocation2] sm:$0xf]  ;;  %v665_v60 = vpop.permute.xlu0 %664  ;;  %v653_v2 = vpop.permute.xlu2 %652 }
  0xe1   : > { %584 = vst.msk [vmem:[#allocation2] sm:$0xf] %vm238_vm2, %v546_v63  ;;  %v1050_v63 = vld [vmem:[%s2380_s19 + $0x2c] sm:$0x1] }
  0xe2   : > { %687 = vst.msk [vmem:[#allocation2 + $0x1c] sm:$0xf] %vm335_vm5, %v665_v60  ;;  %v1091_v50 = vrot.slane %v1050_v63, 5 }
  0xe3   : > { %849 = vst.msk [vmem:[#allocation2 + $0x1c] sm:$0xf] %vm494_vm6, %v827_v54  ;;  %v1502_v54 = vlaneseq }
  0xe4   : > { %v3003_v7 = vld [vmem:[#allocation2] sm:$0xf0]  ;;  %v825_v26 = vpop.permute.xlu1 %824 }
  0xe5   : > { %585 = vst.msk [vmem:[#allocation2 + $0x4] sm:$0xf] %vm238_vm2, %v549_v45  ;;  %v3058_v59 = vshrl.u32 %v1502_v54, 7  ;;  %v2193_v40 = vor.u32 %v3003_v7, %v2993_v23 }
  0xe6   : > { %848 = vst.msk [vmem:[#allocation2 + $0x18] sm:$0xf] %vm494_vm6, %v825_v26 }
  0xe7   : > { %681 = vst.msk [vmem:[#allocation2 + $0x4] sm:$0xf] %vm335_vm5, %v653_v2  ;;  %v3063_v31 = vadd.s32 16, %v3058_v59  ;;  %v1090_v2 = vrot.slane %v1088_v62, 4  ;;  %v3085_v26 = vadd.s32 24, %v3058_v59 }
  0xe8   : > { %v322_v20 = vpop.permute.xlu0 %321  ;;  %1109 = vst.msk [vmem:[#allocation2 + $0x18] sm:$0xf] %vm238_vm2, %v1083_v18  ;;  %v1179_v19 = vpop.permute.xlu2 %1178 }
  0xe9   : > { %344 = vst.msk [vmem:[#allocation2 + $0x20] sm:$0xf] %vm335_vm5, %v322_v20  ;;  %v1574_v6 = vand.u32 65535, %v3063_v31  ;;  %v1603_v21 = vand.u32 65535, %v3085_v26  ;;  %v1604_v35 = vshrl.u32 %v3085_v26, 16 }
  0xea   : > { %503 = vst.msk [vmem:[#allocation2 + $0x20] sm:$0xf] %vm494_vm6, %v481_v46  ;;  %v1575_v46 = vshrl.u32 %v3063_v31, 16 }
  0xeb   : > { %1202 = vst.msk [vmem:[#allocation2 + $0x18] sm:$0xf] %vm335_vm5, %v1179_v19  ;;  %v1578_v41 = vmul.u32 52428, %v1574_v6  ;;  %v1577_v17 = vmul.u32 52429, %v1574_v6  ;;  %v1092_v19 = vsel %vm2389_vm4, %v1090_v2, %v1091_v50  ;;  %v1607_v23 = vmul.u32 52428, %v1603_v21 }
  0xec   : > { %v324_v27 = vpop.permute.xlu1 %323  ;;  %v1579_v24 = vmul.u32 52429, %v1575_v46  ;;  %v1580_v22 = vmul.u32 52428, %v1575_v46  ;;  %v1608_v53 = vmul.u32 52429, %v1604_v35 }
  0xed   : > { %345 = vst.msk [vmem:[#allocation2 + $0x24] sm:$0xf] %vm335_vm5, %v324_v27  ;;  %v1610_v8 = vshll.u32 %v1607_v23, 16 }
  0xee   : > { %v1583_v16 = vshll.u32 %v1579_v24, 16  ;;  %v1612_v0 = vshll.u32 %v1608_v53, 16  ;;  %v1584_v47 = vshrl.u32 %v1579_v24, 16 }
  0xf0   : > { %v483_v55 = vpop.permute.xlu0 %482  ;;  %v1343_v3 = vpop.permute.xlu2 %1342 }
  0xf1   : > { %v2208_v34 = vld [vmem:[#allocation2 + $0x20] sm:$0xf]  ;;  %504 = vst.msk [vmem:[#allocation2 + $0x24] sm:$0xf] %vm494_vm6, %v483_v55 }
  0xf2   : > { %v2265_v13 = vld [vmem:[#allocation2 + $0x18] sm:$0xff]  ;;  %592 = vst.msk [vmem:[#allocation2 + $0x20] sm:$0xf] %vm238_vm2, %v570_v1  ;;  %v1606_v1 = vmul.u32 52429, %v1603_v21 }
  0xf3   : > { %1110 = vst.msk [vmem:[#allocation2 + $0x1c] sm:$0xf] %vm238_vm2, %v1086_v12  ;;  %2188 = vmatmul.msk.bf16.gmra.mxu3 %vm900_vm7, %v2265_v13 }
  0xf4   : > { %v651_v38 = vpop.permute.xlu1 %650  ;;  %vm1614_vm4 = vc.u32 %v1606_v1, %v1610_v8 }
  0xf5   : > { %680 = vst.msk [vmem:[#allocation2] sm:$0xf] %vm335_vm5, %v651_v38 }
  0xf8   : > { %v2260_v4 = vld [vmem:[#allocation2 + $0x20] sm:$0xf0]  ;;  %v813_v51 = vpop.permute.xlu0 %812  ;;  %v829_v15 = vpop.permute.xlu2 %828 }
  0xf9   : > { %593 = vst.msk [vmem:[#allocation2 + $0x24] sm:$0xf] %vm238_vm2, %v573_v28  ;;  %v2209_v14 = vor.u32 %v2260_v4, %v2208_v34  ;;  %v1582_v28 = vshrl.u32 %v1578_v41, 16 }
  0xfa   : > { %842 = vst.msk [vmem:[#allocation2] sm:$0xf] %vm494_vm6, %v813_v51  ;;  %v1609_v51 = vmul.u32 52428, %v1604_v35 }
  0xfb   : > { %2218 = vmatmul.msk.bf16.gmra.mxu1 %vm900_vm7, %v2209_v14  ;;  %1103 = vst.msk [vmem:[#allocation2] sm:$0xf] %vm238_vm2, %v1065_v48 }
  0xfc   : > { %v815_v44 = vpop.permute.xlu1 %814 }
  0xfd   : > { %843 = vst.msk [vmem:[#allocation2 + $0x4] sm:$0xf] %vm494_vm6, %v815_v44 }
 0x100   : > { %v1181_v10 = vpop.permute.xlu0 %1180  ;;  %v3047_v37 = vpop.permute.xlu2 %1184 }
 0x101   : > { %1203 = vst.msk [vmem:[#allocation2 + $0x1c] sm:$0xf] %vm335_vm5, %v1181_v10  ;;  %v1611_v10 = vshrl.u32 %v1607_v23, 16 }
 0x102   : > { %1365 = vst.msk [vmem:[#allocation2 + $0x1c] sm:$0xf] %vm494_vm6, %v1343_v3  ;;  %v1616_v3 = vadd.s32 %v1610_v8, %v1606_v1 }
 0x104   : > { %v1341_v52 = vpop.permute.xlu1 %1340  ;;  %v2262_v56 = vld [vmem:[#allocation2] sm:$0xff]  ;;  %vm1618_vm13 = vc.u32 %v1616_v3, %v1612_v0 }
 0x105   : > { %1364 = vst.msk [vmem:[#allocation2 + $0x18] sm:$0xf] %vm494_vm6, %v1341_v52  ;;  %2185 = vmatmul.msk.bf16.vlgmr.msra.gmra.mxu0 %vm900_vm7, %v2262_v56  ;;  %v1619_v48 = vsel %vm1618_vm13, 1, %v2335_v9  ;;  %v1613_v56 = vshrl.u32 %v1608_v53, 16 }
 0x106   : > { %1104 = vst.msk [vmem:[#allocation2 + $0x4] sm:$0xf] %vm238_vm2, %v1068_v49  ;;  %1440 = vmatpush.bf16.msra.mxu0 %v2803_v29  ;;  %v3116_v49 = vadd.s32 32, %v3058_v59 }
 0x108   : > { %v667_v33 = vpop.permute.xlu0 %666  ;;  %v1167_v11 = vpop.permute.xlu2 %1166  ;;  %v1632_v57 = vand.u32 65535, %v3116_v49 }
 0x109   : > { %688 = vst.msk [vmem:[#allocation2 + $0x20] sm:$0xf] %vm335_vm5, %v667_v33 }
 0x10a   : > { %850 = vst.msk [vmem:[#allocation2 + $0x20] sm:$0xf] %vm494_vm6, %v829_v15  ;;  %1441 = vmatpush.bf16.msra.mxu0 %v2816_v43  ;;  %v1581_v43 = vshll.u32 %v1578_v41, 16  ;;  %v1615_v15 = vsel %vm1614_vm4, 1, %v2335_v9  ;;  %v1636_v62 = vmul.u32 52428, %v1632_v57 }
 0x10b   : > { %1196 = vst.msk [vmem:[#allocation2] sm:$0xf] %vm335_vm5, %v1167_v11  ;;  %v1617_v44 = vadd.s32 %v1615_v15, %v1609_v51  ;;  %v1633_v11 = vshrl.u32 %v3116_v49, 16 }
 0x10c   : > { %v669_v29 = vpop.permute.xlu1 %668  ;;  %v2271_v32 = vld [vmem:[#allocation2 + $0x18] sm:$0xff]  ;;  %v1587_v20 = vadd.s32 %v1581_v43, %v1577_v17  ;;  %vm1585_vm8 = vc.u32 %v1577_v17, %v1581_v43  ;;  %v1639_v46 = vshll.u32 %v1636_v62, 16 }
 0x10d   : > { %689 = vst.msk [vmem:[#allocation2 + $0x24] sm:$0xf] %vm335_vm5, %v669_v29  ;;  %2251 = vmatmul.msk.bf16.gmra.mxu2 %vm900_vm7, %v2271_v32  ;;  %v1586_v27 = vsel %vm1585_vm8, 1, %v2335_v9  ;;  %v1635_v32 = vmul.u32 52429, %v1632_v57  ;;  %v3121_v6 = vmul.u32 52429, %v1633_v11 }
 0x10e   : > { %vm1589_vm10 = vc.u32 %v1587_v20, %v1583_v16  ;;  %v1588_v55 = vadd.s32 %v1586_v27, %v1580_v22 }
 0x10f   : > { %v1590_v36 = vsel %vm1589_vm10, 1, %v2335_v9  ;;  %v1641_v24 = vshll.u32 %v3121_v6, 16  ;;  %vm1643_vm14 = vc.u32 %v1635_v32, %v1639_v46  ;;  %v1645_v43 = vadd.s32 %v1639_v46, %v1635_v32 }
 0x110   : > { %v831_v60 = vpop.permute.xlu0 %830  ;;  %v1331_v38 = vpop.permute.xlu2 %1330  ;;  %v1592_v4 = vadd.s32 %v1590_v36, %v1588_v55  ;;  %v1644_v16 = vsel %vm1643_vm14, 1, %v2335_v9  ;;  %v1640_v36 = vshrl.u32 %v1636_v62, 16 }
 0x111   : > { %851 = vst.msk [vmem:[#allocation2 + $0x24] sm:$0xf] %vm494_vm6, %v831_v60  ;;  %v2179_v45 = vld [vmem:[#allocation2 + $0x20] sm:$0xf] }
 0x112   : > { %1111 = vst.msk [vmem:[#allocation2 + $0x20] sm:$0xf] %vm238_vm2, %v1089_v25  ;;  %v1593_v42 = vadd.s32 %v1592_v4, %v1582_v28  ;;  %v3125_v25 = vadd.s32 40, %v3058_v59 }
 0x114   : > { %v1183_v18 = vpop.permute.xlu1 %1182  ;;  %v1594_v39 = vadd.s32 %v1593_v42, %v1584_v47  ;;  %v1661_v60 = vand.u32 65535, %v3125_v25  ;;  %v1642_v42 = vshrl.u32 %v3121_v6, 16 }
 0x115   : > { %1204 = vst.msk [vmem:[#allocation2 + $0x20] sm:$0xf] %vm335_vm5, %v1183_v18  ;;  %2214 = vmatmul.msk.bf16.vlgmr.msrb.gmra.mxu0 %vm900_vm7, %v2193_v40  ;;  %v1638_v40 = vmul.u32 52428, %v1633_v11 }
 0x116   : > { %v1595_v52 = vshrl.u32 %v1594_v39, 3  ;;  %v1665_v50 = vmul.u32 52428, %v1661_v60  ;;  %v1664_v21 = vmul.u32 52429, %v1661_v60 }
 0x118   : > { %v2266_v7 = vld [vmem:[#allocation2 + $0x20] sm:$0xf0]  ;;  %v1345_v12 = vpop.permute.xlu0 %1344  ;;  %v1596_v30 = vmul.u32 10, %v1595_v52  ;;  %v1668_v35 = vshll.u32 %v1665_v50, 16  ;;  %v1669_v57 = vshrl.u32 %v1665_v50, 16 }
 0x119   : > { %1112 = vst.msk [vmem:[#allocation2 + $0x24] sm:$0xf] %vm238_vm2, %v1092_v19  ;;  %v2180_v13 = vor.u32 %v2266_v7, %v2179_v45  ;;  %v1662_v45 = vshrl.u32 %v3125_v25, 16  ;;  %vm1647_vm2 = vc.u32 %v1645_v43, %v1641_v24  ;;  %v3139_v7 = vld [vmem:[%s3390_s2] ss:$0 sm:$0xff] }
 0x11a   : > { %1205 = vst.msk [vmem:[#allocation2 + $0x24] sm:$0xf] %vm335_vm5, %v3047_v37  ;;  %v1621_v37 = vadd.s32 %v1619_v48, %v1617_v44  ;;  %v1597_v41 = vsub.s32 %v3063_v31, %v1596_v30  ;;  %v1648_v1 = vsel %vm1647_vm2, 1, %v2335_v9  ;;  %vm1672_vm3 = vc.u32 %v1664_v21, %v1668_v35 }
 0x11b   : > { %1366 = vst.msk [vmem:[#allocation2 + $0x20] sm:$0xf] %vm494_vm6, %v1345_v12  ;;  %2189 = vmatmul.msk.bf16.gmra.mxu3 %vm900_vm7, %v2180_v13  ;;  %v1666_v19 = vmul.u32 52429, %v1662_v45  ;;  %v1646_v12 = vadd.s32 %v1644_v16, %v1638_v40  ;;  %v1674_v55 = vadd.s32 %v1668_v35, %v1664_v21  ;;  %v1667_v3 = vmul.u32 52428, %v1662_v45 }
 0x11c   : > { %v1347_v34 = vpop.permute.xlu1 %1346  ;;  %v1622_v54 = vadd.s32 %v1621_v37, %v1611_v10  ;;  %vm1805_vm15 = vcmp.ne.s32.totalorder %v1597_v41, 0  ;;  %vm1815_vm0 = vcmp.lt.s32.totalorder %v1597_v41, 0  ;;  %v1835_v31 = vadd.s32 10, %v1597_v41 }
 0x11d   : > { %1367 = vst.msk [vmem:[#allocation2 + $0x24] sm:$0xf] %vm494_vm6, %v1347_v34  ;;  %vm3131_vm1 = vmand %vm1815_vm0, %vm1805_vm15  ;;  %v1670_v8 = vshll.u32 %v1666_v19, 16  ;;  %v1650_v0 = vadd.s32 %v1648_v1, %v1646_v12  ;;  %v1671_v46 = vshrl.u32 %v1666_v19, 16 }
 0x11e   : > { %v1623_v29 = vadd.s32 %v1622_v54, %v1613_v56  ;;  %v1020_v18 = vpop.f32.mrf.mxu1  ;;  %v1845_v13 = vsel %vm3131_vm1, %v1835_v31, %v1597_v41 }
 0x11f   : > { %vm1676_vm8 = vc.u32 %v1674_v55, %v1670_v8  ;;  %v1651_v44 = vadd.s32 %v1650_v0, %v1640_v36 }
 0x120   : > { %v1169_v14 = vpop.permute.xlu0 %1168  ;;  %v1624_v63 = vshrl.u32 %v1623_v29, 3  ;;  %v1677_v39 = vsel %vm1676_vm8, 1, %v2335_v9 }
 0x121   : > { %1197 = vst.msk [vmem:[#allocation2 + $0x4] sm:$0xf] %vm335_vm5, %v1169_v14 }
 0x122   : > { %1359 = vst.msk [vmem:[#allocation2 + $0x4] sm:$0xf] %vm494_vm6, %v1331_v38  ;;  %v1625_v2 = vmul.u32 10, %v1624_v63  ;;  %v1673_v38 = vsel %vm1672_vm3, 1, %v2335_v9 }
 0x124   : > { %v1329_v61 = vpop.permute.xlu1 %1328  ;;  %v2272_v5 = vld [vmem:[#allocation2 + $0x20] sm:$0xff]  ;;  %v1626_v22 = vsub.s32 %v3085_v26, %v1625_v2 }
 0x125   : > { %1358 = vst.msk [vmem:[#allocation2] sm:$0xf] %vm494_vm6, %v1329_v61  ;;  %2252 = vmatmul.msk.bf16.gmra.mxu2 %vm900_vm7, %v2272_v5  ;;  %v1675_v61 = vadd.s32 %v1673_v38, %v1667_v3 }
 0x126   : > { %vm1806_vm5 = vcmp.ne.s32.totalorder %v1626_v22, 0  ;;  %vm1816_vm6 = vcmp.lt.s32.totalorder %v1626_v22, 0  ;;  %v1022_v28 = vpop.f32.mrf.mxu1  ;;  %v1836_v51 = vadd.s32 10, %v1626_v22 }
 0x127   : > { %vm3146_vm10 = vmand %vm1816_vm6, %vm1806_vm5  ;;  %v1679_v11 = vadd.s32 %v1677_v39, %v1675_v61 }
 0x128   : > { %v1846_v37 = vsel %vm3146_vm10, %v1836_v51, %v1626_v22 }
 0x129   : > { %vm1856_vm4 = vcmp.lt.s32.totalorder %v1846_v37, 8  ;;  %v1680_v41 = vadd.s32 %v1679_v11, %v1669_v57 }
 0x12b   : > { %v1681_v45 = vadd.s32 %v1680_v41, %v1671_v46 }
 0x12c   : > { %v2268_v33 = vld [vmem:[#allocation2] sm:$0xff] }
 0x12d   : > { %2248 = vmatmul.msk.bf16.vlgmr.msra.gmra.mxu0 %vm900_vm7, %v2268_v33  ;;  %vm1855_vm7 = vcmp.lt.s32.totalorder %v1845_v13, 8  ;;  %v1652_v33 = vadd.s32 %v1651_v44, %v1642_v42  ;;  %v1682_v16 = vshrl.u32 %v1681_v45, 3 }
 0x12e   : > { %v934_v17 = vpop.f32.mrf.mxu3  ;;  %v1025_v19 = vpop.f32.mrf.mxu1 }
 0x12f   : > { %v1021_v23 = vadd.f32 %v1020_v18, %v934_v17  ;;  %v1653_v6 = vshrl.u32 %v1652_v33, 3  ;;  %v1683_v35 = vmul.u32 10, %v1682_v16 }
 0x131   : > { %v1654_v43 = vmul.u32 10, %v1653_v6  ;;  %v1684_v12 = vsub.s32 %v3125_v25, %v1683_v35 }
 0x133   : > { %v1655_v31 = vsub.s32 %v3116_v49, %v1654_v43  ;;  %v3167_v49 = vadd.s32 48, %v3058_v59  ;;  %vm1808_vm0 = vcmp.ne.s32.totalorder %v1684_v12, 0  ;;  %vm1818_vm1 = vcmp.lt.s32.totalorder %v1684_v12, 0 }
 0x134   : > { %v1838_v36 = vadd.s32 10, %v1684_v12  ;;  %vm3172_vm3 = vmand %vm1818_vm1, %vm1808_vm0 }
 0x135   : > { %vm1807_vm13 = vcmp.ne.s32.totalorder %v1655_v31, 0  ;;  %vm1817_vm14 = vcmp.lt.s32.totalorder %v1655_v31, 0  ;;  %v1837_v22 = vadd.s32 10, %v1655_v31  ;;  %v1690_v55 = vand.u32 65535, %v3167_v49 }
 0x136   : > { %v936_v26 = vpop.f32.mrf.mxu3  ;;  %vm1827_vm15 = vmand %vm1817_vm14, %vm1807_vm13  ;;  %v1691_v0 = vshrl.u32 %v3167_v49, 16  ;;  %v1848_v44 = vsel %vm3172_vm3, %v1838_v36, %v1684_v12 }
 0x137   : > { %v1023_v14 = vadd.f32 %v1022_v28, %v936_v26  ;;  %v1847_v1 = vsel %vm1827_vm15, %v1837_v22, %v1655_v31  ;;  %v1027_v26 = vpop.f32.mrf.mxu1  ;;  %v1694_v25 = vmul.u32 52428, %v1690_v55  ;;  %vm1858_vm6 = vcmp.lt.s32.totalorder %v1848_v44, 8 }
 0x138   : > { %vm1857_vm2 = vcmp.lt.s32.totalorder %v1847_v1, 8  ;;  %v1695_v51 = vmul.u32 52429, %v1691_v0  ;;  %v1696_v37 = vmul.u32 52428, %v1691_v0 }
 0x13a   : > { %v1699_v61 = vshll.u32 %v1695_v51, 16  ;;  %v1700_v12 = vshrl.u32 %v1695_v51, 16  ;;  %v1517_v51 = vshrl.u32 %v3058_v59, 16 }
 0x13c   : > { %v1448_v27 = vpop.f32.mrf.mxu2 }
 0x13d   : > { %v1470_v53 = vadd.f32 %v1448_v27, %v1021_v23 }
 0x13f   : > { %v1484_v34 = vadd.f32 %v3139_v7, %v1470_v53 }
 0x141   : > { %v1494_v4 = vmax.f32 %v1484_v34, 0.0 }
 0x143   : > { %v1885_v47 = vsel %vm1855_vm7, %v1494_v4, 0.0  ;;  %v1693_v4 = vmul.u32 52429, %v1690_v55 }
 0x144   : > { %v1900_v5 = vpack.c.bf16 %v1885_v47, %v1885_v47  ;;  %v1450_v48 = vpop.f32.mrf.mxu2 }
 0x145   : > { %v1471_v10 = vadd.f32 %v1450_v48, %v1023_v14  ;;  %v1697_v14 = vshll.u32 %v1694_v25, 16 }
 0x146   : > { %v1928_v52 = vshrl.u32 %v1900_v5, 16  ;;  %v1931_v56 = vshll.u32 %v1900_v5, 16 }
 0x147   : > { %v1485_v54 = vadd.f32 %v3139_v7, %v1471_v10  ;;  %vm1701_vm5 = vc.u32 %v1693_v4, %v1697_v14  ;;  %v1703_v39 = vadd.s32 %v1697_v14, %v1693_v4 }
 0x148   : > { %v1930_v30 = vrot.slane %v1928_v52, 6  ;;  %v1933_v29 = vrot.slane %v1931_v56, 7  ;;  %v939_v21 = vpop.f32.mrf.mxu3  ;;  %v3180_v52 = vadd.s32 56, %v3058_v59  ;;  %v1702_v33 = vsel %vm1701_vm5, 1, %v2335_v9 }
 0x149   : > { %v1495_v62 = vmax.f32 %v1485_v54, 0.0  ;;  %v1026_v23 = vadd.f32 %v1025_v19, %v939_v21  ;;  %vm1705_vm7 = vc.u32 %v1703_v39, %v1699_v61  ;;  %v1704_v6 = vadd.s32 %v1702_v33, %v1696_v37 }
 0x14a   : > { %v3155_v60 = vor.u32 %v1933_v29, %v1930_v30  ;;  %v1719_v11 = vand.u32 65535, %v3180_v52  ;;  %v1720_v29 = vshrl.u32 %v3180_v52, 16  ;;  %v3212_v61 = vmul.u32 52429, %v1517_v51 }
 0x14b   : > { %v1886_v32 = vsel %vm1856_vm4, %v1495_v62, 0.0 }
 0x14c   : > { %v1901_v63 = vpack.c.bf16 %v1886_v32, %v1886_v32  ;;  %v1936_v50 = vrot.slane %v3155_v60, 4  ;;  %v1722_v46 = vmul.u32 52429, %v1719_v11  ;;  %v1723_v41 = vmul.u32 52428, %v1719_v11 }
 0x14d   : > { %v1724_v43 = vmul.u32 52429, %v1720_v29  ;;  %v1725_v19 = vmul.u32 52428, %v1720_v29  ;;  %v1525_v33 = vshll.u32 %v3212_v61, 16 }
 0x14e   : > { %v1938_v17 = vshrl.u32 %v1901_v63, 16  ;;  %v1941_v24 = vshll.u32 %v1901_v63, 16  ;;  %v1726_v45 = vshll.u32 %v1723_v41, 16 }
 0x14f   : > { %v1728_v31 = vshll.u32 %v1724_v43, 16 }
 0x150   : > { %v1940_v2 = vrot.slane %v1938_v17, 6  ;;  %v1943_v18 = vrot.slane %v1941_v24, 7  ;;  %v941_v53 = vpop.f32.mrf.mxu3  ;;  %v1706_v24 = vsel %vm1705_vm7, 1, %v2335_v9  ;;  %vm1730_vm8 = vc.u32 %v1722_v46, %v1726_v45 }
 0x151   : > { %v1028_v3 = vadd.f32 %v1027_v26, %v941_v53  ;;  %v1732_v16 = vadd.s32 %v1726_v45, %v1722_v46  ;;  %v1731_v35 = vsel %vm1730_vm8, 1, %v2335_v9  ;;  %v1522_v46 = vmul.u32 52428, %v1517_v51  ;;  %vm3271_vm8 = vmand %vm540_vm12, %vm701_vm9 }
 0x152   : > { %v3158_v40 = vor.u32 %v1943_v18, %v1940_v2  ;;  %v1733_v1 = vadd.s32 %v1731_v35, %v1725_v19 }
 0x153   : > { %vm1734_vm10 = vc.u32 %v1732_v16, %v1728_v31 }
 0x154   : > { %v1945_v20 = vsel %vm2445_vm11, %v1936_v50, %v3158_v40  ;;  %v1946_v62 = vrot.slane %v3158_v40, 4  ;;  %v1698_v50 = vshrl.u32 %v1694_v25, 16  ;;  %v1708_v40 = vadd.s32 %v1706_v24, %v1704_v6 }
 0x155   : > { %2026 = vst [vmem:[%s3082_s10 + $0x10] sm:$0xf] %v1945_v20  ;;  %v1735_v53 = vsel %vm1734_vm10, 1, %v2335_v9 }
 0x156   : > { %v1737_v36 = vadd.s32 %v1735_v53, %v1733_v1 }
 0x15c   : > { %v1453_v27 = vpop.f32.mrf.mxu2 }
 0x15d   : > { %v1472_v13 = vadd.f32 %v1453_v27, %v1026_v23  ;;  %v1709_v27 = vadd.s32 %v1708_v40, %v1698_v50 }
 0x15f   : > { %v1486_v8 = vadd.f32 %v3139_v7, %v1472_v13  ;;  %v1710_v55 = vadd.s32 %v1709_v27, %v1700_v12 }
 0x161   : > { %v1496_v34 = vmax.f32 %v1486_v8, 0.0  ;;  %v3199_v8 = vadd.s32 64, %v3058_v59  ;;  %v1711_v38 = vshrl.u32 %v1710_v55, 3 }
 0x163   : > { %v1887_v28 = vsel %vm1857_vm2, %v1496_v34, 0.0  ;;  %v1748_v26 = vand.u32 65535, %v3199_v8  ;;  %v1727_v34 = vshrl.u32 %v1723_v41, 16  ;;  %v1749_v0 = vshrl.u32 %v3199_v8, 16 }
 0x164   : > { %v1902_v15 = vpack.c.bf16 %v1887_v28, %v1887_v28  ;;  %v1455_v47 = vpop.f32.mrf.mxu2  ;;  %v1729_v28 = vshrl.u32 %v1724_v43, 16 }
 0x165   : > { %v1473_v42 = vadd.f32 %v1455_v47, %v1028_v3  ;;  %v3203_v25 = vmul.u32 52428, %v1748_v26  ;;  %v1516_v3 = vand.u32 65535, %v3058_v59  ;;  %v1738_v4 = vadd.s32 %v1737_v36, %v1727_v34 }
 0x166   : > { %v1948_v5 = vshrl.u32 %v1902_v15, 16  ;;  %v1951_v48 = vshll.u32 %v1902_v15, 16  ;;  %v1751_v15 = vmul.u32 52429, %v1748_v26  ;;  %v3209_v47 = vmul.u32 52429, %v1749_v0 }
 0x167   : > { %v1487_v10 = vadd.f32 %v3139_v7, %v1473_v42  ;;  %v3207_v14 = vmul.u32 52428, %v1516_v3  ;;  %v1755_v42 = vshll.u32 %v3203_v25, 16  ;;  %v1519_v44 = vmul.u32 52429, %v1516_v3 }
 0x168   : > { %v1950_v56 = vrot.slane %v1948_v5, 6  ;;  %v1953_v54 = vrot.slane %v1951_v48, 7  ;;  %v1712_v5 = vmul.u32 10, %v1711_v38  ;;  %v1739_v48 = vadd.s32 %v1738_v4, %v1729_v28 }
 0x169   : > { %v1497_v57 = vmax.f32 %v1487_v10, 0.0  ;;  %v1523_v39 = vshll.u32 %v3207_v14, 16  ;;  %v1757_v10 = vshll.u32 %v3209_v47, 16  ;;  %vm1759_vm4 = vc.u32 %v1751_v15, %v1755_v42 }
 0x16a   : > { %v1954_v30 = vor.u32 %v1953_v54, %v1950_v56  ;;  %v1761_v37 = vadd.s32 %v1755_v42, %v1751_v15  ;;  %v3217_v56 = vadd.s32 72, %v3058_v59  ;;  %v1754_v54 = vmul.u32 52428, %v1749_v0 }
 0x16b   : > { %v1888_v32 = vsel %vm1858_vm6, %v1497_v57, 0.0  ;;  %vm1527_vm13 = vc.u32 %v1519_v44, %v1523_v39  ;;  %v1529_v57 = vadd.s32 %v1523_v39, %v1519_v44  ;;  %v1740_v29 = vshrl.u32 %v1739_v48, 3 }
 0x16c   : > { %v1955_v63 = vsel %vm2445_vm11, %v1946_v62, %v1954_v30  ;;  %v1903_v17 = vpack.c.bf16 %v1888_v32, %v1888_v32  ;;  %v1956_v22 = vrot.slane %v1954_v30, 4  ;;  %v1777_v11 = vand.u32 65535, %v3217_v56 }
 0x16d   : > { %2027 = vst [vmem:[%s3082_s10 + $0x14] sm:$0xf] %v1955_v63  ;;  %v3224_v30 = vsub.s32 %v3167_v49, %v1712_v5  ;;  %v1760_v32 = vsel %vm1759_vm4, 1, %v2335_v9  ;;  %v1778_v6 = vshrl.u32 %v3217_v56, 16  ;;  %vm1763_vm14 = vc.u32 %v1761_v37, %v1757_v10  ;;  %v1895_v10 = vld [vmem:[%s3082_s10 + $0x4] sm:$0x3] }
 0x16e   : > { %v1958_v2 = vshrl.u32 %v1903_v17, 16  ;;  %v1961_v18 = vshll.u32 %v1903_v17, 16  ;;  %v1780_v41 = vmul.u32 52429, %v1777_v11  ;;  %v3228_v63 = vmul.u32 52428, %v1777_v11 }
 0x16f   : > { %v1528_v17 = vsel %vm1527_vm13, 1, %v2335_v9  ;;  %v3231_v24 = vmul.u32 52429, %v1778_v6  ;;  %v1762_v43 = vadd.s32 %v1760_v32, %v1754_v54  ;;  %vm1531_vm15 = vc.u32 %v1529_v57, %v1525_v33 }
 0x170   : > { %v1960_v20 = vrot.slane %v1958_v2, 6  ;;  %v1963_v21 = vrot.slane %v1961_v18, 7  ;;  %v1784_v45 = vshll.u32 %v3228_v63, 16  ;;  %v3235_v49 = vadd.s32 8, %v3058_v59 }
 0x171   : > { %vm1809_vm0 = vcmp.ne.s32.totalorder %v3224_v30, 0  ;;  %v1741_v2 = vmul.u32 10, %v1740_v29  ;;  %v1764_v18 = vsel %vm1763_vm14, 1, %v2335_v9  ;;  %v1786_v50 = vshll.u32 %v3231_v24, 16 }
 0x172   : > { %v3191_v23 = vor.u32 %v1963_v21, %v1960_v20  ;;  %v1530_v31 = vadd.s32 %v1528_v17, %v1522_v46  ;;  %vm1788_vm1 = vc.u32 %v1780_v41, %v1784_v45  ;;  %v1790_v16 = vadd.s32 %v1784_v45, %v1780_v41 }
 0x173   : > { %v1545_v20 = vand.u32 65535, %v3235_v49  ;;  %vm1819_vm2 = vcmp.lt.s32.totalorder %v3224_v30, 0  ;;  %v1532_v21 = vsel %vm1531_vm15, 1, %v2335_v9  ;;  %v1783_v19 = vmul.u32 52428, %v1778_v6 }
 0x174   : > { %v1965_v13 = vsel %vm2445_vm11, %v1956_v22, %v3191_v23  ;;  %v1546_v35 = vshrl.u32 %v3235_v49, 16  ;;  %v1030_v22 = vpop.f32.mrf.mxu1  ;;  %v1756_v12 = vshrl.u32 %v3203_v25, 16  ;;  %v1766_v27 = vadd.s32 %v1764_v18, %v1762_v43  ;;  %vm3254_vm5 = vmand %vm1819_vm2, %vm1809_vm0 }
 0x175   : > { %2028 = vst [vmem:[%s3082_s10 + $0x18] sm:$0xf] %v1965_v13  ;;  %v1789_v13 = vsel %vm1788_vm1, 1, %v2335_v9  ;;  %v1839_v1 = vadd.s32 10, %v3224_v30  ;;  %v3248_v53 = vsub.s32 %v3180_v52, %v1741_v2  ;;  %vm1792_vm3 = vc.u32 %v1790_v16, %v1786_v50 }
 0x176   : > { %v944_v40 = vpop.f32.mrf.mxu3  ;;  %v3250_v55 = vmul.u32 52428, %v1545_v20  ;;  %v1524_v34 = vshrl.u32 %v3207_v14, 16  ;;  %v1534_v36 = vadd.s32 %v1532_v21, %v1530_v31  ;;  %v1548_v0 = vmul.u32 52429, %v1545_v20 }
 0x177   : > { %v1031_v25 = vadd.f32 %v1030_v22, %v944_v40  ;;  %v1791_v38 = vadd.s32 %v1789_v13, %v1783_v19  ;;  %v1550_v52 = vmul.u32 52429, %v1546_v35  ;;  %v1758_v28 = vshrl.u32 %v3209_v47, 16 }
 0x178   : > { %v1767_v4 = vadd.s32 %v1766_v27, %v1756_v12  ;;  %v1793_v51 = vsel %vm1792_vm3, 1, %v2335_v9  ;;  %v1552_v15 = vshll.u32 %v3250_v55, 16  ;;  %v1849_v14 = vsel %vm3254_vm5, %v1839_v1, %v3224_v30 }
 0x179   : > { %vm1810_vm6 = vcmp.ne.s32.totalorder %v3248_v53, 0  ;;  %v1551_v44 = vmul.u32 52428, %v1546_v35  ;;  %v1526_v48 = vshrl.u32 %v3212_v61, 16  ;;  %v1535_v39 = vadd.s32 %v1534_v36, %v1524_v34 }
 0x17a   : > { %vm1556_vm7 = vc.u32 %v1548_v0, %v1552_v15  ;;  %v1785_v37 = vshrl.u32 %v3228_v63, 16  ;;  %v1795_v54 = vadd.s32 %v1793_v51, %v1791_v38  ;;  %v1554_v33 = vshll.u32 %v1550_v52, 16 }
 0x17b   : > { %v1557_v57 = vsel %vm1556_vm7, 1, %v2335_v9  ;;  %vm1820_vm10 = vcmp.lt.s32.totalorder %v3248_v53, 0  ;;  %v1768_v61 = vadd.s32 %v1767_v4, %v1758_v28  ;;  %v1896_v29 = vsel %vm3271_vm8, 0, %v1895_v10 }
 0x17c   : > { %vm1859_vm9 = vcmp.lt.s32.totalorder %v1849_v14, 8  ;;  %1897 = vst [vmem:[%s3082_s10 + $0x4] sm:$0x3] %v1896_v29  ;;  %v1558_v32 = vadd.s32 %v1552_v15, %v1548_v0  ;;  %v1559_v6 = vadd.s32 %v1557_v57, %v1551_v44  ;;  %v1032_v46 = vpop.f32.mrf.mxu1  ;;  %v1840_v63 = vadd.s32 10, %v3248_v53  ;;  %vm3286_vm12 = vmand %vm1820_vm10, %vm1810_vm6 }
 0x17d   : > { %v1536_v17 = vadd.s32 %v1535_v39, %v1526_v48  ;;  %v1787_v2 = vshrl.u32 %v3231_v24, 16  ;;  %v1796_v18 = vadd.s32 %v1795_v54, %v1785_v37  ;;  %v1769_v40 = vshrl.u32 %v1768_v61, 3 }
 0x17e   : > { %v946_v11 = vpop.f32.mrf.mxu3  ;;  %vm1560_vm4 = vc.u32 %v1558_v32, %v1554_v33  ;;  %v1553_v31 = vshrl.u32 %v3250_v55, 16  ;;  %v1850_v12 = vsel %vm3286_vm12, %v1840_v63, %v3248_v53  ;;  %v1555_v13 = vshrl.u32 %v1550_v52, 16 }
 0x17f   : > { %v1033_v43 = vadd.f32 %v1032_v46, %v946_v11  ;;  %v1561_v16 = vsel %vm1560_vm4, 1, %v2335_v9  ;;  %v1537_v27 = vshrl.u32 %v1536_v17, 3  ;;  %v1797_v26 = vadd.s32 %v1796_v18, %v1787_v2 }
 0x180   : > { %v1563_v35 = vadd.s32 %v1561_v16, %v1559_v6  ;;  %v1770_v55 = vmul.u32 10, %v1769_v40  ;;  %vm1860_vm13 = vcmp.lt.s32.totalorder %v1850_v12, 8  ;;  %v1966_v4 = vrot.slane %v3191_v23, 4 }
 0x181   : > { %v1538_v38 = vmul.u32 10, %v1537_v27  ;;  %v1798_v53 = vshrl.u32 %v1797_v26, 3 }
 0x182   : > { %v3221_v62 = vpop.f32.mrf.mxu0  ;;  %v1564_v36 = vadd.s32 %v1563_v35, %v1553_v31  ;;  %v1771_v52 = vsub.s32 %v3199_v8, %v1770_v55 }
 0x183   : > { %v1539_v44 = vsub.s32 %v3058_v59, %v1538_v38  ;;  %v1799_v54 = vmul.u32 10, %v1798_v53 }
 0x184   : > { %v1565_v28 = vadd.s32 %v1564_v36, %v1555_v13  ;;  %vm1811_vm14 = vcmp.ne.s32.totalorder %v1771_v52, 0  ;;  %vm1821_vm15 = vcmp.lt.s32.totalorder %v1771_v52, 0  ;;  %v1035_v23 = vpop.f32.mrf.mxu1  ;;  %v1841_v8 = vadd.s32 10, %v1771_v52 }
 0x185   : > { %vm1803_vm0 = vcmp.ne.s32.totalorder %v1539_v44, 0  ;;  %vm1813_vm1 = vcmp.lt.s32.totalorder %v1539_v44, 0  ;;  %vm3305_vm2 = vmand %vm1821_vm15, %vm1811_vm14  ;;  %v1800_v29 = vsub.s32 %v3217_v56, %v1799_v54  ;;  %v1833_v6 = vadd.s32 10, %v1539_v44 }
 0x186   : > { %vm3313_vm3 = vmand %vm1813_vm1, %vm1803_vm0  ;;  %v1851_v45 = vsel %vm3305_vm2, %v1841_v8, %v1771_v52  ;;  %vm2018_vm14 = vcmask 1043457   ;;  %vm2019_vm15 = vsmask.f32 7942 }
 0x187   : > { %vm1812_vm5 = vcmp.ne.s32.totalorder %v1800_v29, 0  ;;  %vm1822_vm6 = vcmp.lt.s32.totalorder %v1800_v29, 0  ;;  %v1843_v40 = vsel %vm3313_vm3, %v1833_v6, %v1539_v44  ;;  %vm1861_vm7 = vcmp.lt.s32.totalorder %v1851_v45, 8  ;;  %vm3348_vm2 = vmand %vm2018_vm14, %vm2019_vm15 }
 0x188   : > { %v1842_v16 = vadd.s32 10, %v1800_v29  ;;  %vm3326_vm10 = vmand %vm1822_vm6, %vm1812_vm5  ;;  %vm1853_vm4 = vcmp.lt.s32.totalorder %v1843_v40, 8 }
 0x18a   : > { %v3259_v3 = vpop.f32.mrf.mxu0 }
 0x190   : > { %v1458_v42 = vpop.f32.mrf.mxu2 }
 0x191   : > { %v1474_v5 = vadd.f32 %v1458_v42, %v1031_v25 }
 0x192   : > { %v1015_v21 = vpop.f32.mrf.mxu0 }
 0x193   : > { %v1488_v30 = vadd.f32 %v3139_v7, %v1474_v5  ;;  %v1566_v5 = vshrl.u32 %v1565_v28, 3  ;;  %v1016_v17 = vadd.f32 %v1015_v21, %v3221_v62 }
 0x195   : > { %v1498_v41 = vmax.f32 %v1488_v30, 0.0  ;;  %v1567_v11 = vmul.u32 10, %v1566_v5 }
 0x197   : > { %v1889_v50 = vsel %vm1859_vm9, %v1498_v41, 0.0  ;;  %v1568_v56 = vsub.s32 %v3235_v49, %v1567_v11  ;;  %v1037_v49 = vpop.f32.mrf.mxu1 }
 0x198   : > { %v1904_v20 = vpack.c.bf16 %v1889_v50, %v1889_v50  ;;  %v1460_v19 = vpop.f32.mrf.mxu2 }
 0x199   : > { %v1475_v22 = vadd.f32 %v1460_v19, %v1033_v43  ;;  %vm1804_vm9 = vcmp.ne.s32.totalorder %v1568_v56, 0  ;;  %vm1814_vm12 = vcmp.lt.s32.totalorder %v1568_v56, 0  ;;  %v1834_v12 = vadd.s32 10, %v1568_v56 }
 0x19a   : > { %v1968_v24 = vshrl.u32 %v1904_v20, 16  ;;  %v1971_v1 = vshll.u32 %v1904_v20, 16  ;;  %v1017_v10 = vpop.f32.mrf.mxu0 }
 0x19b   : > { %v1489_v34 = vadd.f32 %v3139_v7, %v1475_v22  ;;  %v1018_v26 = vadd.f32 %v1017_v10, %v3259_v3 }
 0x19c   : > { %v1970_v9 = vrot.slane %v1968_v24, 6  ;;  %v1973_v0 = vrot.slane %v1971_v1, 7  ;;  %v1852_v24 = vsel %vm3326_vm10, %v1842_v16, %v1800_v29 }
 0x19d   : > { %v1499_v25 = vmax.f32 %v1489_v34, 0.0  ;;  %vm3338_vm0 = vcmp.lt.s32.totalorder %v1852_v24, 8 }
 0x19e   : > { %v1974_v51 = vor.u32 %v1973_v0, %v1970_v9  ;;  %v949_v37 = vpop.f32.mrf.mxu3 }
 0x19f   : > { %v1890_v15 = vsel %vm1860_vm13, %v1499_v25, 0.0  ;;  %v1036_v32 = vadd.f32 %v1035_v23, %v949_v37  ;;  %vm3332_vm13 = vmand %vm1814_vm12, %vm1804_vm9  ;;  %v2021_v37 = vld [vmem:[%s3082_s10 + $0x4] sm:$0xe] }
 0x1a0   : > { %v1975_v42 = vsel %vm2445_vm11, %v1966_v4, %v1974_v51  ;;  %v1905_v14 = vpack.c.bf16 %v1890_v15, %v1890_v15  ;;  %v1976_v30 = vrot.slane %v1974_v51, 4  ;;  %v1844_v51 = vsel %vm3332_vm13, %v1834_v12, %v1568_v56 }
 0x1a1   : > { %2029 = vst [vmem:[%s3082_s10 + $0x1c] sm:$0xf] %v1975_v42  ;;  %vm1854_vm1 = vcmp.lt.s32.totalorder %v1844_v51, 8 }
 0x1a2   : > { %v1978_v48 = vshrl.u32 %v1905_v14, 16  ;;  %v1981_v39 = vshll.u32 %v1905_v14, 16 }
 0x1a4   : > { %v1980_v33 = vrot.slane %v1978_v48, 6  ;;  %v1983_v57 = vrot.slane %v1981_v39, 7 }
 0x1a6   : > { %v3303_v61 = vor.u32 %v1983_v57, %v1980_v33  ;;  %v951_v31 = vpop.f32.mrf.mxu3 }
 0x1a7   : > { %v1038_v19 = vadd.f32 %v1037_v49, %v951_v31 }
 0x1a8   : > { %v1985_v46 = vsel %vm2445_vm11, %v1976_v30, %v3303_v61  ;;  %v1463_v41 = vpop.f32.mrf.mxu2  ;;  %v1986_v42 = vrot.slane %v3303_v61, 4 }
 0x1a9   : > { %2030 = vst [vmem:[%s3082_s10 + $0x20] sm:$0xf] %v1985_v46  ;;  %v1476_v43 = vadd.f32 %v1463_v41, %v1036_v32 }
 0x1aa   : > { %v1443_v2 = vpop.f32.mrf.mxu0 }
 0x1ab   : > { %v1490_v18 = vadd.f32 %v3139_v7, %v1476_v43  ;;  %v1468_v50 = vadd.f32 %v1443_v2, %v1016_v17  ;;  %v2033_v17 = vld [vmem:[%s3082_s10 + $0x2c] sm:$0x3] }
 0x1ad   : > { %v1500_v62 = vmax.f32 %v1490_v18, 0.0  ;;  %v1482_v20 = vadd.f32 %v3139_v7, %v1468_v50 }
 0x1af   : > { %v1891_v35 = vsel %vm1861_vm7, %v1500_v62, 0.0  ;;  %v1492_v22 = vmax.f32 %v1482_v20, 0.0 }
 0x1b0   : > { %v1906_v27 = vpack.c.bf16 %v1891_v35, %v1891_v35  ;;  %v1465_v13 = vpop.f32.mrf.mxu2 }
 0x1b1   : > { %v1883_v34 = vsel %vm1853_vm4, %v1492_v22, 0.0  ;;  %v1477_v55 = vadd.f32 %v1465_v13, %v1038_v19 }
 0x1b2   : > { %v1988_v36 = vshrl.u32 %v1906_v27, 16  ;;  %v1991_v9 = vshll.u32 %v1906_v27, 16  ;;  %v1898_v0 = vpack.c.bf16 %v1883_v34, %v1883_v34  ;;  %v1445_v25 = vpop.f32.mrf.mxu0 }
 0x1b3   : > { %v1491_v38 = vadd.f32 %v3139_v7, %v1477_v55  ;;  %v1469_v4 = vadd.f32 %v1445_v25, %v1018_v26 }
 0x1b4   : > { %v1990_v3 = vrot.slane %v1988_v36, 6  ;;  %v1993_v53 = vrot.slane %v1991_v9, 7  ;;  %v1909_v15 = vshrl.u32 %v1898_v0, 16  ;;  %v1912_v52 = vshll.u32 %v1898_v0, 16 }
 0x1b5   : > { %v1501_v14 = vmax.f32 %v1491_v38, 0.0  ;;  %v1483_v44 = vadd.f32 %v3139_v7, %v1469_v4 }
 0x1b6   : > { %v1994_v5 = vor.u32 %v1993_v53, %v1990_v3  ;;  %v1911_v48 = vrot.slane %v1909_v15, 6  ;;  %v1914_v39 = vrot.slane %v1912_v52, 7 }
 0x1b7   : > { %v1892_v54 = vsel %vm3338_vm0, %v1501_v14, 0.0  ;;  %v1493_v23 = vmax.f32 %v1483_v44, 0.0 }
 0x1b8   : > { %v1995_v33 = vsel %vm2445_vm11, %v1986_v42, %v1994_v5  ;;  %v1915_v7 = vor.u32 %v1914_v39, %v1911_v48  ;;  %v1907_v57 = vpack.c.bf16 %v1892_v54, %v1892_v54  ;;  %v1996_v41 = vrot.slane %v1994_v5, 4 }
 0x1b9   : > { %2031 = vst [vmem:[%s3082_s10 + $0x24] sm:$0xf] %v1995_v33  ;;  %v1884_v8 = vsel %vm1854_vm1, %v1493_v23, 0.0 }
 0x1ba   : > { %v2022_v11 = vsel %vm3348_vm2, %v1915_v7, %v2021_v37  ;;  %v1998_v30 = vshrl.u32 %v1907_v57, 16  ;;  %v2001_v61 = vshll.u32 %v1907_v57, 16  ;;  %v1899_v59 = vpack.c.bf16 %v1884_v8, %v1884_v8 }
 0x1bb   : > { %2023 = vst [vmem:[%s3082_s10 + $0x4] sm:$0xe] %v2022_v11  ;;  %v1916_v18 = vrot.slane %v1915_v7, 4 }
 0x1bc   : > { %v2000_v29 = vrot.slane %v1998_v30, 6  ;;  %v2003_v32 = vrot.slane %v2001_v61, 7  ;;  %v1918_v6 = vshrl.u32 %v1899_v59, 16  ;;  %v1921_v46 = vshll.u32 %v1899_v59, 16 }
 0x1be   : > { %v2004_v63 = vor.u32 %v2003_v32, %v2000_v29  ;;  %v1920_v43 = vrot.slane %v1918_v6, 6  ;;  %v1923_v45 = vrot.slane %v1921_v46, 7 }
 0x1c0   : > { %v2005_v56 = vsel %vm2445_vm11, %v1996_v41, %v2004_v63  ;;  %v2006_v2 = vrot.slane %v2004_v63, 4  ;;  %v1924_v50 = vor.u32 %v1923_v45, %v1920_v43 }
 0x1c1   : > { %2032 = vst [vmem:[%s3082_s10 + $0x28] sm:$0xf] %v2005_v56 }
 0x1c2   : > { %v2034_v40 = vsel %vm3271_vm8, %v2006_v2, %v2033_v17  ;;  %v1925_v31 = vsel %vm2445_vm11, %v1916_v18, %v1924_v50  ;;  %v1926_v16 = vrot.slane %v1924_v50, 4 }
 0x1c3   : > { %2035 = vst [vmem:[%s3082_s10 + $0x2c] sm:$0x3] %v2034_v40 }
 0x1c4   : > { %2024 = vst [vmem:[%s3082_s10 + $0x8] sm:$0xf] %v1925_v31  ;;  %v1935_v62 = vsel %vm2445_vm11, %v1926_v16, %v3155_v60 }
 0x1c5   : > { %2025 = vst [vmem:[%s3082_s10 + $0xc] sm:$0xf] %v1935_v62 }
 0x1ca   : > { %v2036_v20 = vld [vmem:[%s3082_s10 + $0x2c] sm:$0xe] }
 0x1cb   : > { %v2037_v21 = vsel %vm3348_vm2, 0, %v2036_v20 }
 0x1cc   : > { %2038 = vst [vmem:[%s3082_s10 + $0x2c] sm:$0xe] %v2037_v21 }
 0x1cd PF: > { %s13_s14 = sadd.s32 1, %s2331_s14   ;;  %s3428_s12 = smov %s2327_s13 }
 0x1ce   : > { %p10_p5 = scmp.ge.s32.totalorder %s13_s14, 4   ;;  %s3429_s13 = smov %s3431_s15 }
 0x1d0   :  { %12 = sbr.rel (!%p10_p5) target bundleno = 2 (0x2), region = 70 }

</bundles_post_ra>
